<compile_context>
chip_gen: v5e
topology: v5e:2x2
jax: 0.10.0
libtpu: 0.0.40
codegen_flags: <defaults>
</compile_context>

<pallas_src>
import jax
import jax.numpy as jnp
from jax import lax
from jax.experimental import pallas as pl
from jax.experimental.pallas import tpu as pltpu

BN_EPS = 1e-5  # nn.BatchNorm2d default eps
LANE = 128


def _round_up(x, m):
    return (x + m - 1) // m * m


def _pick_tile(n, target):
    """Largest divisor of n that is <= target (>= 1)."""
    for t in range(min(n, target), 0, -1):
        if n % t == 0:
            return t
    return 1


def _subsample(a, stride, axis):
    """Every `stride`-th element along `axis` via pad+reshape+slice
    (Mosaic-friendly alternative to strided slicing of values)."""
    if stride == 1:
        return a
    L = a.shape[axis]
    Lq = -(-L // stride)
    pad = Lq * stride - L
    if pad:
        widths = [(0, 0)] * a.ndim
        widths[axis] = (0, pad)
        a = jnp.pad(a, widths)
    new_shape = a.shape[:axis] + (Lq, stride) + a.shape[axis + 1:]
    a = a.reshape(new_shape)
    a = lax.slice_in_dim(a, 0, 1, axis=axis + 1)
    return a.reshape(a.shape[:axis] + (Lq,) + a.shape[axis + 2:])


# ---------------------------------------------------------------------------
# kernel 1: conv (single big matmul per tile) + BN partial stats
# ---------------------------------------------------------------------------
def _make_conv_kernel(*, kh, kw, s, tile_ho, wo, cin, K, Kp, cpad):
    m_tile = tile_ho * wo
    row_step = tile_ho * s
    span_h = (tile_ho - 1) * s + 1
    span_w = (wo - 1) * s + 1

    def kernel(x_ref, w_ref, conv_ref, stats_ref):
        # x_ref    : [Hpad, Wpad, Cin]    bf16  (full padded image, one batch elem)
        # w_ref    : [Kp, Cpad]           bf16  (flattened, padded conv weight)
        # conv_ref : [tile_ho, Wo, Cpad]  f32   (conv output tile, lane-dense)
        # stats_ref: [2, Cpad]            f32   (per-tile sum / sum-of-squares)
        j = pl.program_id(1)
        row0 = j * row_step
        if row_step % 8 == 0:
            row0 = pl.multiple_of(row0, 8)

        # Build the im2col patch: taps are sliced straight from the ref (so the
        # full input is never materialized as one value) and concatenated along
        # the lane dim.  The concat runs in f32 (robust 32-bit lane layout);
        # operands are cast to bf16 only for the MXU matmul.
        cols = []
        for ky in range(kh):
            for kx in range(kw):
                if s == 1:
                    sl = x_ref[pl.ds(row0 + ky, tile_ho), pl.ds(kx, wo), :]
                else:
                    sl = x_ref[pl.ds(row0 + ky, span_h), pl.ds(kx, span_w), :]
                    sl = _subsample(sl, s, 0)
                    sl = _subsample(sl, s, 1)
                cols.append(sl.reshape(m_tile, cin).astype(jnp.float32))
        if Kp > K:
            cols.append(jnp.zeros((m_tile, Kp - K), dtype=jnp.float32))
        patch = jnp.concatenate(cols, axis=1).astype(jnp.bfloat16)  # [m_tile, Kp]

        # ONE matmul with contraction depth Kp (vs kh*kw tiny K=cin matmuls).
        acc = jnp.dot(patch, w_ref[...],
                      preferred_element_type=jnp.float32)           # [m_tile, Cpad]
        conv_ref[...] = acc.reshape(tile_ho, wo, cpad)

        # BN partial stats for this tile (finalized outside the kernel).
        s1 = jnp.sum(acc, axis=0, keepdims=True)
        s2 = jnp.sum(acc * acc, axis=0, keepdims=True)
        stats_ref[...] = jnp.concatenate([s1, s2], axis=0)

    return kernel


# ---------------------------------------------------------------------------
# kernel 2: BN normalize (precomputed scale/shift) + ReLU + MaxPool
# ---------------------------------------------------------------------------
def _make_bn_relu_pool_kernel(*, ho, wo, hpo, wpo, cpad, kp, sp, pp):
    fast_pool = (pp == 0) and (kp == sp)

    def kernel(conv_ref, scale_ref, shift_ref, o_ref):
        # conv_ref : [Ho, Wo, Cpad] f32 ; scale/shift: [1, Cpad] f32
        scale = scale_ref[...].reshape(1, 1, cpad)
        shift = shift_ref[...].reshape(1, 1, cpad)
        y = conv_ref[...] * scale + shift           # BatchNorm (batch stats)
        y = jnp.maximum(y, 0.0)                     # ReLU

        if fast_pool:
            # kp == sp, no padding: pooling is a reshape + max over window axes.
            y = y[:hpo * sp, :wpo * sp, :]
            y = y.reshape(hpo * sp, wpo, sp, cpad)
            y = jnp.max(y, axis=2)
            y = y.reshape(hpo, sp, wpo, cpad)
            y = jnp.max(y, axis=1)
            o_ref[...] = y
        else:
            if pp > 0:
                y = jnp.pad(y, ((pp, pp), (pp, pp), (0, 0)),
                            constant_values=-jnp.inf)
            span_ph = (hpo - 1) * sp + 1
            span_pw = (wpo - 1) * sp + 1
            pooled = jnp.full((hpo, wpo, cpad), -jnp.inf, dtype=jnp.float32)
            for py in range(kp):
                for px in range(kp):
                    p_ = y[py:py + span_ph, px:px + span_pw, :]
                    p_ = _subsample(p_, sp, 0)
                    p_ = _subsample(p_, sp, 1)
                    pooled = jnp.maximum(pooled, p_)
            o_ref[...] = pooled

    return kernel


# ---------------------------------------------------------------------------
# wrapper
# ---------------------------------------------------------------------------
def lflb_forward(x_nchw, w_oihw, b, gamma, beta, *, stride_cnn, padding_cnn,
                 kernel_size_pool, stride_pool, padding_pool):
    """LFLB forward.  `b` (conv bias) is accepted for API parity but is
    mathematically cancelled by training-mode BatchNorm mean subtraction, so it
    is not sent to the kernel (saves a VPU pass and one input DMA)."""
    del b  # exactly cancelled by BN: (x+b) - mean(x+b) == x - mean(x)

    n, cin, h, w_in = x_nchw.shape
    cout, cin_w, kh, kw = w_oihw.shape
    assert cin == cin_w
    s, p = stride_cnn, padding_cnn
    kp, sp, pp = kernel_size_pool, stride_pool, padding_pool

    ho = (h + 2 * p - kh) // s + 1
    wo = (w_in + 2 * p - kw) // s + 1
    hpo = (ho + 2 * pp - kp) // sp + 1
    wpo = (wo + 2 * pp - kp) // sp + 1
    hpad, wpad = h + 2 * p, w_in + 2 * p

    cpad = _round_up(cout, LANE)          # lane-dense channels
    K = kh * kw * cin                     # fused contraction depth
    Kp = _round_up(K, 8)

    # ---- glue: layout conversion & casts ----
    x_nhwc = jnp.transpose(x_nchw, (0, 2, 3, 1))
    x_pad = jnp.pad(x_nhwc, ((0, 0), (p, p), (p, p), (0, 0))).astype(jnp.bfloat16)

    # [Cout,Cin,KH,KW] -> [KH,KW,Cin,Cout] -> [K,Cout] -> zero-pad -> [Kp,Cpad]
    w_flat = jnp.transpose(w_oihw, (2, 3, 1, 0)).reshape(K, cout)
    w_flat = jnp.pad(w_flat, ((0, Kp - K), (0, cpad - cout))).astype(jnp.bfloat16)

    tile_ho = _pick_tile(ho, 8)
    n_ht = ho // tile_ho

    # ---- kernel 1: conv + BN partial stats ----
    conv_kernel = _make_conv_kernel(kh=kh, kw=kw, s=s, tile_ho=tile_ho, wo=wo,
                                    cin=cin, K=K, Kp=Kp, cpad=cpad)
    blk1 = (2 * hpad * wpad * cin * 2 + Kp * cpad * 2
            + 2 * tile_ho * wo * cpad * 4
            + 4 * tile_ho * wo * max(Kp, cpad))
    vmem1 = int(min(max(2 * blk1, 8 << 20), 32 << 20))
    conv_out, stats = pl.pallas_call(
        conv_kernel,
        out_shape=(jax.ShapeDtypeStruct((n, ho, wo, cpad), jnp.float32),
                   jax.ShapeDtypeStruct((n, n_ht, 2, cpad), jnp.float32)),
        grid=(n, n_ht),
        in_specs=[
            # full padded image per batch element; re-DMA'd only when the batch
            # index changes, row tiles are sliced from the ref inside the kernel
            pl.BlockSpec((None, hpad, wpad, cin), lambda i, j: (i, 0, 0, 0)),
            pl.BlockSpec((Kp, cpad), lambda i, j: (0, 0)),
        ],
        out_specs=(
            pl.BlockSpec((None, tile_ho, wo, cpad), lambda i, j: (i, j, 0, 0)),
            pl.BlockSpec((None, None, 2, cpad), lambda i, j: (i, j, 0, 0)),
        ),
        compiler_params=pltpu.CompilerParams(
            dimension_semantics=("parallel", "parallel"),
            vmem_limit_bytes=vmem1),
    )(x_pad, w_flat)

    # ---- BN finalize (tiny glue): global mean/var -> per-channel scale/shift
    # TODO(synk): nn.BatchNorm2d also updates running_mean/running_var buffers
    # (training-time side effect); not modeled -- forward output uses batch stats.
    tot = jnp.sum(stats, axis=(0, 1))                       # [2, Cpad]
    m_total = jnp.float32(n * ho * wo)
    mean = tot[0] / m_total
    var = jnp.maximum(tot[1] / m_total - mean * mean, 0.0)  # biased variance
    inv = lax.rsqrt(var + BN_EPS)
    gamma_p = jnp.pad(gamma.astype(jnp.float32), (0, cpad - cout))
    beta_p = jnp.pad(beta.astype(jnp.float32), (0, cpad - cout))
    scale = (gamma_p * inv).reshape(1, cpad)
    shift = (beta_p - mean * gamma_p * inv).reshape(1, cpad)

    # ---- kernel 2: BN normalize + ReLU + MaxPool (lane-dense output) ----
    pool_kernel = _make_bn_relu_pool_kernel(ho=ho, wo=wo, hpo=hpo, wpo=wpo,
                                            cpad=cpad, kp=kp, sp=sp, pp=pp)
    blk2 = 2 * ho * wo * cpad * 4 + 2 * hpo * wpo * cpad * 4
    vmem2 = int(min(max(2 * blk2, 8 << 20), 32 << 20))
    out = pl.pallas_call(
        pool_kernel,
        out_shape=jax.ShapeDtypeStruct((n, hpo, wpo, cpad), jnp.float32),
        grid=(n,),
        in_specs=[
            pl.BlockSpec((None, ho, wo, cpad), lambda i: (i, 0, 0, 0)),
            pl.BlockSpec((1, cpad), lambda i: (0, 0)),
            pl.BlockSpec((1, cpad), lambda i: (0, 0)),
        ],
        out_specs=pl.BlockSpec((None, hpo, wpo, cpad), lambda i: (i, 0, 0, 0)),
        compiler_params=pltpu.CompilerParams(
            dimension_semantics=("parallel",),
            vmem_limit_bytes=vmem2),
    )(conv_out, scale, shift)

    # glue: drop channel padding, NHWC -> NCHW (PyTorch convention)
    return jnp.transpose(out[..., :cout], (0, 3, 1, 2))


# ---------------------------------------------------------------------------
# pure-JAX reference
# ---------------------------------------------------------------------------
def lflb_reference(x_nchw, w_oihw, b, gamma, beta, *, stride_cnn, padding_cnn,
                   kernel_size_pool, stride_pool, padding_pool,
                   conv_dtype=jnp.float32):
    s, p = stride_cnn, padding_cnn
    kp, sp, pp = kernel_size_pool, stride_pool, padding_pool
    x = jnp.transpose(x_nchw, (0, 2, 3, 1)).astype(conv_dtype)
    w = jnp.transpose(w_oihw, (2, 3, 1, 0)).astype(conv_dtype)  # HWIO
    conv = lax.conv_general_dilated(
        x, w, (s, s), [(p, p), (p, p)],
        dimension_numbers=("NHWC", "HWIO", "NHWC"),
        preferred_element_type=jnp.float32) + b.astype(jnp.float32)
    mean = conv.mean((0, 1, 2))
    var = ((conv - mean) ** 2).mean((0, 1, 2))   # biased (training-mode BN)
    y = (conv - mean) / jnp.sqrt(var + BN_EPS) * gamma + beta
    y = jnp.maximum(y, 0.0)
    pooled = lax.reduce_window(
        y, -jnp.inf, lax.max,
        (1, kp, kp, 1), (1, sp, sp, 1),
        [(0, 0), (pp, pp), (pp, pp), (0, 0)])
    return jnp.transpose(pooled, (0, 3, 1, 2))


if __name__ == "__main__":
    key = jax.random.PRNGKey(0)
    k1, k2, k3, k4, k5 = jax.random.split(key, 5)

    # Small LFLB config: Conv2d(4->8, k=3, s=1, p=1), MaxPool2d(k=2, s=2, p=0)
    N, CIN, H, W = 2, 4, 16, 16
    COUT, KCNN = 8, 3
    cfg = dict(stride_cnn=1, padding_cnn=1,
               kernel_size_pool=2, stride_pool=2, padding_pool=0)

    x = jax.random.normal(k1, (N, CIN, H, W), jnp.float32)
    w = 0.1 * jax.random.normal(k2, (COUT, CIN, KCNN, KCNN), jnp.float32)
    b = 0.1 * jax.random.normal(k3, (COUT,), jnp.float32)
    gamma = 1.0 + 0.1 * jax.random.normal(k4, (COUT,), jnp.float32)
    beta = 0.1 * jax.random.normal(k5, (COUT,), jnp.float32)

    out = lflb_forward(x, w, b, gamma, beta, **cfg)
    out = jax.block_until_ready(out)

    # Tight check vs a reference using the same matmul operand precision as the
    # kernel (bf16 operands, f32 accumulate); loose sanity check vs full f32.
    ref_bf16 = lflb_reference(x, w, b, gamma, beta, conv_dtype=jnp.bfloat16, **cfg)
    ref_f32 = lflb_reference(x, w, b, gamma, beta, conv_dtype=jnp.float32, **cfg)

    assert out.shape == ref_bf16.shape, (out.shape, ref_bf16.shape)
    err_bf16 = float(jnp.max(jnp.abs(out - ref_bf16)))
    err_f32 = float(jnp.max(jnp.abs(out - ref_f32)))
    assert jnp.allclose(out, ref_bf16, rtol=1e-3, atol=1e-3), err_bf16
    assert err_f32 < 5e-2, err_f32

    print("KERNEL_OK")
</pallas_src>

<mosaic_0001>
module attributes {stable_mosaic.version = 11 : i64} {
  func.func @kernel(%arg0: i32, %arg1: i32, %arg2: memref<1x18x18x4xbf16, #tpu.memory_space<vmem>>, %arg3: memref<40x128xbf16, #tpu.memory_space<vmem>>, %arg4: memref<1x8x16x128xf32, #tpu.memory_space<vmem>>, %arg5: memref<1x1x2x128xf32, #tpu.memory_space<vmem>>) attributes {dimension_semantics = [#tpu.dimension_semantics<parallel>, #tpu.dimension_semantics<parallel>], iteration_bounds = array<i64: 2, 2>, scalar_prefetch = 0 : i64, scratch_operands = 0 : i64, tpu.core_type = #tpu.core_type<tc>, window_params = [{transform_indices = @transform_0, window_bounds = array<i64: 1, 18, 18, 4>}, {pipeline_mode = #tpu.pipeline_mode<synchronous>, transform_indices = @transform_1, window_bounds = array<i64: 40, 128>}, {transform_indices = @transform_2, window_bounds = array<i64: 1, 8, 16, 128>}, {transform_indices = @transform_3, window_bounds = array<i64: 1, 1, 2, 128>}]} {
    %c8_i32 = arith.constant 8 : i32
    %0 = arith.muli %arg1, %c8_i32 : i32
    %1 = tpu.assume_multiple %0, 8 : i32
    %c0_i32 = arith.constant 0 : i32
    %2 = arith.addi %1, %c0_i32 : i32
    %c0 = arith.constant 0 : index
    %3 = arith.index_cast %2 : i32 to index
    %c0_0 = arith.constant 0 : index
    %c0_1 = arith.constant 0 : index
    %4 = vector.load %arg2[%c0, %3, %c0_0, %c0_1] : memref<1x18x18x4xbf16, #tpu.memory_space<vmem>>, vector<1x8x16x4xbf16>
    %5 = vector.shape_cast %4 : vector<1x8x16x4xbf16> to vector<8x16x4xbf16>
    %6 = vector.shape_cast %5 : vector<8x16x4xbf16> to vector<128x4xbf16>
    %7 = arith.extf %6 : vector<128x4xbf16> to vector<128x4xf32>
    %c0_i32_2 = arith.constant 0 : i32
    %8 = arith.addi %1, %c0_i32_2 : i32
    %c0_3 = arith.constant 0 : index
    %9 = arith.index_cast %8 : i32 to index
    %c1 = arith.constant 1 : index
    %c0_4 = arith.constant 0 : index
    %10 = vector.load %arg2[%c0_3, %9, %c1, %c0_4] : memref<1x18x18x4xbf16, #tpu.memory_space<vmem>>, vector<1x8x16x4xbf16>
    %11 = vector.shape_cast %10 : vector<1x8x16x4xbf16> to vector<8x16x4xbf16>
    %12 = vector.shape_cast %11 : vector<8x16x4xbf16> to vector<128x4xbf16>
    %13 = arith.extf %12 : vector<128x4xbf16> to vector<128x4xf32>
    %c0_i32_5 = arith.constant 0 : i32
    %14 = arith.addi %1, %c0_i32_5 : i32
    %c0_6 = arith.constant 0 : index
    %15 = arith.index_cast %14 : i32 to index
    %c2 = arith.constant 2 : index
    %c0_7 = arith.constant 0 : index
    %16 = vector.load %arg2[%c0_6, %15, %c2, %c0_7] : memref<1x18x18x4xbf16, #tpu.memory_space<vmem>>, vector<1x8x16x4xbf16>
    %17 = vector.shape_cast %16 : vector<1x8x16x4xbf16> to vector<8x16x4xbf16>
    %18 = vector.shape_cast %17 : vector<8x16x4xbf16> to vector<128x4xbf16>
    %19 = arith.extf %18 : vector<128x4xbf16> to vector<128x4xf32>
    %c1_i32 = arith.constant 1 : i32
    %20 = arith.addi %1, %c1_i32 : i32
    %c0_8 = arith.constant 0 : index
    %21 = arith.index_cast %20 : i32 to index
    %c0_9 = arith.constant 0 : index
    %c0_10 = arith.constant 0 : index
    %22 = vector.load %arg2[%c0_8, %21, %c0_9, %c0_10] : memref<1x18x18x4xbf16, #tpu.memory_space<vmem>>, vector<1x8x16x4xbf16>
    %23 = vector.shape_cast %22 : vector<1x8x16x4xbf16> to vector<8x16x4xbf16>
    %24 = vector.shape_cast %23 : vector<8x16x4xbf16> to vector<128x4xbf16>
    %25 = arith.extf %24 : vector<128x4xbf16> to vector<128x4xf32>
    %c1_i32_11 = arith.constant 1 : i32
    %26 = arith.addi %1, %c1_i32_11 : i32
    %c0_12 = arith.constant 0 : index
    %27 = arith.index_cast %26 : i32 to index
    %c1_13 = arith.constant 1 : index
    %c0_14 = arith.constant 0 : index
    %28 = vector.load %arg2[%c0_12, %27, %c1_13, %c0_14] : memref<1x18x18x4xbf16, #tpu.memory_space<vmem>>, vector<1x8x16x4xbf16>
    %29 = vector.shape_cast %28 : vector<1x8x16x4xbf16> to vector<8x16x4xbf16>
    %30 = vector.shape_cast %29 : vector<8x16x4xbf16> to vector<128x4xbf16>
    %31 = arith.extf %30 : vector<128x4xbf16> to vector<128x4xf32>
    %c1_i32_15 = arith.constant 1 : i32
    %32 = arith.addi %1, %c1_i32_15 : i32
    %c0_16 = arith.constant 0 : index
    %33 = arith.index_cast %32 : i32 to index
    %c2_17 = arith.constant 2 : index
    %c0_18 = arith.constant 0 : index
    %34 = vector.load %arg2[%c0_16, %33, %c2_17, %c0_18] : memref<1x18x18x4xbf16, #tpu.memory_space<vmem>>, vector<1x8x16x4xbf16>
    %35 = vector.shape_cast %34 : vector<1x8x16x4xbf16> to vector<8x16x4xbf16>
    %36 = vector.shape_cast %35 : vector<8x16x4xbf16> to vector<128x4xbf16>
    %37 = arith.extf %36 : vector<128x4xbf16> to vector<128x4xf32>
    %c2_i32 = arith.constant 2 : i32
    %38 = arith.addi %1, %c2_i32 : i32
    %c0_19 = arith.constant 0 : index
    %39 = arith.index_cast %38 : i32 to index
    %c0_20 = arith.constant 0 : index
    %c0_21 = arith.constant 0 : index
    %40 = vector.load %arg2[%c0_19, %39, %c0_20, %c0_21] : memref<1x18x18x4xbf16, #tpu.memory_space<vmem>>, vector<1x8x16x4xbf16>
    %41 = vector.shape_cast %40 : vector<1x8x16x4xbf16> to vector<8x16x4xbf16>
    %42 = vector.shape_cast %41 : vector<8x16x4xbf16> to vector<128x4xbf16>
    %43 = arith.extf %42 : vector<128x4xbf16> to vector<128x4xf32>
    %c2_i32_22 = arith.constant 2 : i32
    %44 = arith.addi %1, %c2_i32_22 : i32
    %c0_23 = arith.constant 0 : index
    %45 = arith.index_cast %44 : i32 to index
    %c1_24 = arith.constant 1 : index
    %c0_25 = arith.constant 0 : index
    %46 = vector.load %arg2[%c0_23, %45, %c1_24, %c0_25] : memref<1x18x18x4xbf16, #tpu.memory_space<vmem>>, vector<1x8x16x4xbf16>
    %47 = vector.shape_cast %46 : vector<1x8x16x4xbf16> to vector<8x16x4xbf16>
    %48 = vector.shape_cast %47 : vector<8x16x4xbf16> to vector<128x4xbf16>
    %49 = arith.extf %48 : vector<128x4xbf16> to vector<128x4xf32>
    %c2_i32_26 = arith.constant 2 : i32
    %50 = arith.addi %1, %c2_i32_26 : i32
    %c0_27 = arith.constant 0 : index
    %51 = arith.index_cast %50 : i32 to index
    %c2_28 = arith.constant 2 : index
    %c0_29 = arith.constant 0 : index
    %52 = vector.load %arg2[%c0_27, %51, %c2_28, %c0_29] : memref<1x18x18x4xbf16, #tpu.memory_space<vmem>>, vector<1x8x16x4xbf16>
    %53 = vector.shape_cast %52 : vector<1x8x16x4xbf16> to vector<8x16x4xbf16>
    %54 = vector.shape_cast %53 : vector<8x16x4xbf16> to vector<128x4xbf16>
    %55 = arith.extf %54 : vector<128x4xbf16> to vector<128x4xf32>
    %cst = arith.constant 0.000000e+00 : f32
    %56 = vector.broadcast %cst : f32 to vector<128x4xf32>
    %57 = tpu.concatenate %7, %13, %19, %25, %31, %37, %43, %49, %55, %56 in 1 : vector<128x4xf32>, vector<128x4xf32>, vector<128x4xf32>, vector<128x4xf32>, vector<128x4xf32>, vector<128x4xf32>, vector<128x4xf32>, vector<128x4xf32>, vector<128x4xf32>, vector<128x4xf32> -> vector<128x40xf32>
    %58 = arith.truncf %57 : vector<128x40xf32> to vector<128x40xbf16>
    %c0_30 = arith.constant 0 : index
    %c0_31 = arith.constant 0 : index
    %59 = vector.load %arg3[%c0_30, %c0_31] : memref<40x128xbf16, #tpu.memory_space<vmem>>, vector<40x128xbf16>
    %cst_32 = arith.constant dense<0.000000e+00> : vector<128x128xf32>
    %60 = tpu.matmul %58, %59, %cst_32 {dimension_numbers = #tpu.dot_dimension_numbers<[1], [0], [0], [1], [0, 0, 1, 1], [], []>} : vector<128x40xbf16>, vector<40x128xbf16>, vector<128x128xf32> -> vector<128x128xf32>
    %61 = vector.shape_cast %60 : vector<128x128xf32> to vector<8x16x128xf32>
    %c0_33 = arith.constant 0 : index
    %c0_34 = arith.constant 0 : index
    %c0_35 = arith.constant 0 : index
    %c0_36 = arith.constant 0 : index
    %62 = vector.load %arg4[%c0_33, %c0_34, %c0_35, %c0_36] : memref<1x8x16x128xf32, #tpu.memory_space<vmem>>, vector<1x8x16x128xf32>
    %63 = vector.shape_cast %62 : vector<1x8x16x128xf32> to vector<8x16x128xf32>
    %64 = vector.shape_cast %61 : vector<8x16x128xf32> to vector<1x8x16x128xf32>
    tpu.vector_store %arg4[%c0_33, %c0_34, %c0_35, %c0_36], %64 {strides = array<i32>} : memref<1x8x16x128xf32, #tpu.memory_space<vmem>>, vector<1x8x16x128xf32>,
    %cst_37 = arith.constant dense<0.000000e+00> : vector<128xf32>
    %65 = vector.multi_reduction <add>, %60, %cst_37 [0] : vector<128x128xf32> to vector<128xf32>
    %66 = vector.shape_cast %65 : vector<128xf32> to vector<1x128xf32>
    %67 = arith.mulf %60, %60 : vector<128x128xf32>
    %cst_38 = arith.constant dense<0.000000e+00> : vector<128xf32>
    %68 = vector.multi_reduction <add>, %67, %cst_38 [0] : vector<128x128xf32> to vector<128xf32>
    %69 = vector.shape_cast %68 : vector<128xf32> to vector<1x128xf32>
    %70 = tpu.concatenate %66, %69 in 0 : vector<1x128xf32>, vector<1x128xf32> -> vector<2x128xf32>
    %c0_39 = arith.constant 0 : index
    %c0_40 = arith.constant 0 : index
    %c0_41 = arith.constant 0 : index
    %c0_42 = arith.constant 0 : index
    %71 = vector.load %arg5[%c0_39, %c0_40, %c0_41, %c0_42] : memref<1x1x2x128xf32, #tpu.memory_space<vmem>>, vector<1x1x2x128xf32>
    %72 = vector.shape_cast %71 : vector<1x1x2x128xf32> to vector<2x128xf32>
    %73 = vector.shape_cast %70 : vector<2x128xf32> to vector<1x1x2x128xf32>
    tpu.vector_store %arg5[%c0_39, %c0_40, %c0_41, %c0_42], %73 {strides = array<i32>} : memref<1x1x2x128xf32, #tpu.memory_space<vmem>>, vector<1x1x2x128xf32>,
    return
  }
  func.func @transform_0(%arg0: i32, %arg1: i32) -> (i32, i32, i32, i32) {
    %c0_i32 = arith.constant 0 : i32
    %c0_i32_0 = arith.constant 0 : i32
    %c0_i32_1 = arith.constant 0 : i32
    %c0_i32_2 = arith.constant 0 : i32
    return %arg0, %c0_i32, %c0_i32_0, %c0_i32_1 : i32, i32, i32, i32
  }
  func.func @transform_1(%arg0: i32, %arg1: i32) -> (i32, i32) {
    %c0_i32 = arith.constant 0 : i32
    %c0_i32_0 = arith.constant 0 : i32
    %c0_i32_1 = arith.constant 0 : i32
    return %c0_i32, %c0_i32_0 : i32, i32
  }
  func.func @transform_2(%arg0: i32, %arg1: i32) -> (i32, i32, i32, i32) {
    %c0_i32 = arith.constant 0 : i32
    %c0_i32_0 = arith.constant 0 : i32
    %c0_i32_1 = arith.constant 0 : i32
    return %arg0, %arg1, %c0_i32, %c0_i32_0 : i32, i32, i32, i32
  }
  func.func @transform_3(%arg0: i32, %arg1: i32) -> (i32, i32, i32, i32) {
    %c0_i32 = arith.constant 0 : i32
    %c0_i32_0 = arith.constant 0 : i32
    %c0_i32_1 = arith.constant 0 : i32
    return %arg0, %arg1, %c0_i32, %c0_i32_0 : i32, i32, i32, i32
  }
}

</mosaic_0001>

<bundles_post_ra>
// kernel: tpu_custom_call.1
= control target key start
LH: loop header
LB: loop body
LE: loop exit
PB: predicated region body
PF: predicated region fallthrough
CT: control target
= control target key end

     0   :  { %9 = vsyncpa [#allocation3], 0  ;;  %s4237_s0 = inlined_call_operand.vmem [shape: bf16[2,18,18,4], index: 0, kind: input, shape index: {}]   ;;  %s4238_s1 = inlined_call_operand.vmem [shape: bf16[40,128], index: 1, kind: input, shape index: {}]   ;;  %s4239_s2 = inlined_call_operand.hbm [shape: f32[2,16,16,128], index: 2, kind: output, shape index: {0}]   ;;  %s4240_s3 = inlined_call_operand.hbm [shape: f32[2,2,2,128], index: 3, kind: output, shape index: {1}]  }
   0x1   :  { %11 = vsyncpa [#allocation3 + $0x1], 0 }
   0x2   :  { %12 = vsyncpa [#allocation5], 0 }
   0x3   :  { %14 = vsyncpa [#allocation5 + $0x1], 0  ;;  %s3097_s12 = smov 0   ;;  %s3099_s13 = smov 0  }
   0x4   :  { %s3101_s14 = smov 0   ;;  %s3103_s15 = smov 0  }
   0x5   :  { %s3105_s16 = smov 0   ;;  %s3107_s17 = smov 0  }
   0x6   :  { %s3109_s18 = smov 0   ;;  %s3111_s19 = smov 0  }
   0x7 LB: > { %s2377_s20 = sadd.s32 4294967295, %s3066_s19   ;;  %s2378_s21 = sadd.s32 4294967294, %s3066_s19   ;;  %s3066_s19 = sphi %s3111_s19, %s20_s19   ;;  %s3062_s18 = sphi %s3109_s18, %s4253_s18   ;;  %s3058_s17 = sphi %s3107_s17, %s4252_s17   ;;  %s3054_s16 = sphi %s3105_s16, %s4251_s16   ;;  %s3050_s15 = sphi %s3103_s15, %s4250_s15   ;;  %s3046_s14 = sphi %s3101_s14, %s4249_s14   ;;  %s3042_s13 = sphi %s3099_s13, %s4248_s13   ;;  %s3038_s12 = sphi %s3097_s12, %s4247_s12  }
   0x8   : > { %s29_s22 = sadd.s32 1, %s3058_s17  ;;  %s32_s23 = sadd.s32 1, %s3062_s18 }
   0x9   : > { %p30_p0 = scmp.ge.s32.totalorder %s29_s22, 2  ;;  %p98_p1 = scmp.ne.s32.totalorder %s3046_s14, %s3042_s13 }
   0xa   : > { %p99_p2 = scmp.eq.s32.totalorder %s2377_s20, 3  ;;  %p104_p5 = scmp.ne.s32.totalorder %s3042_s13, %s3038_s12 }
   0xb   : > { %s4255_s22 = smov (%p30_p0, %s29_s22), 0  ;;  %s4257_s23 = smov (!%p30_p0, %s32_s23), %s3062_s18 }
   0xc   : > { %s84_s24 = ssub.s32 %s3058_s17, %s4255_s22  ;;  %p3148_p3 = por %p99_p2, %p98_p1 }
   0xd   : > { %p34_p4 = scmp.ge.s32.totalorder %s4257_s23, 2  ;;  %p105_p6 = scmp.eq.s32.totalorder %s2378_s21, 3 }
   0xe   : > { %p2381_p7 = scmp.ge.s32.totalorder %s3066_s19, 1  ;;  %p162_p9 = scmp.lt.s32.totalorder %s3066_s19, 5 }
   0xf   : > { %s4259_s23 = smov (%p34_p4, %s4257_s23), 0  ;;  %p3157_p8 = por %p105_p6, %p104_p5 }
  0x10   : > { %s83_s27 = ssub.s32 %s3062_s18, %s4259_s23  ;;  %s88_s28 = sadd.s32 1, %s3046_s14 }
  0x11   : > { %s85_s29 = sor.u32 %s84_s24, %s83_s27  ;;  %p163_p10 = pnand %p2381_p7, %p162_p9 }
  0x12   : > { %p86_p11 = scmp.eq.s32.totalorder %s85_s29, 0  ;;  %p191_p12 = scmp.lt.s32.totalorder (!%p163_p10), %s3054_s16, 1 }
  0x13   : > { %166 = sbr.rel (%p163_p10) target bundleno = 521 (0x209), region = 28  ;;  %s3068_s11 = smov (!%p163_p10), 8  }
  0x14   : > { %s3166_s30 = scalar_select %p86_p11, %s3046_s14, %s88_s28  }
  0x15   : > { %s2506_s5 = smul.u32 (!%p163_p10), 96, %s3050_s15  ;;  %s3069_s20 = smov (!%p163_p10), 4  }
  0x16   : > { %s3070_s21 = smov (!%p163_p10), 12   ;;  %s3071_s24 = smov (!%p163_p10), 24  }
  0x17   : > { %s3072_s27 = smov (!%p163_p10), 20   ;;  %s3073_s28 = smov (!%p163_p10), 16  }
  0x18   : > { %s192_s4 = scalar_select %p191_p12, %s3054_s16, 1  ;;  %vm501_vm0 = vcmask 1042432   ;;  %vm502_vm1 = vcmask 1046532   ;;  %vm242_vm3 = vsmask.f32 3328  ;;  %vm1880_vm6 = vcmask 31744  }
  0x19   : > { %vm3176_vm2 = vmor %vm501_vm0, %vm502_vm1  ;;  %vm243_vm4 = vsmask.f32 7440  ;;  %s3074_s29 = smov 32   ;;  %vm1897_vm7 = vcmask 64512   ;;  %vm1914_vm8 = vcmask 97280   ;;  %vm2086_vm9 = vcmask 1043456  }
  0x1a   : > { %s2519_s6 = smul.u32 216, %s192_s4  ;;  %vm3201_vm5 = vmor %vm242_vm3, %vm243_vm4  ;;  %s3075_s4 = smov 28   ;;  %vm1931_vm10 = vcmask 130048   ;;  %vm1948_vm11 = vcmask 162816   ;;  %vm1965_vm12 = vcmask 195584   ;;  %vm1982_vm13 = vcmask 228352  }
  0x1b   : > { %vm1999_vm14 = vcmask 261120   ;;  %vm2016_vm15 = vcmask 293888   ;;  %vm2061_vm0 = vcmask 326656  }
  0x1c   : > { %s195_s9 = scalar_lea.vmem %s4237_s0, %s2519_s6 }
  0x1d   : > { %s3174_s10 = scalar_lea.vmem %s195_s9, %s2506_s5  ;;  %s2960_s5 = scalar_lea.hbm %s4239_s2, 512 }
  0x1e   : > { %v203_v1 = vld [vmem:[%s3174_s10 + $0x4] sm:$0xf]  ;;  %v234_v2 = vld [vmem:[%s3174_s10 + $0x8] sm:$0x1]  ;;  %v469_v3 = vld [vmem:[%s3174_s10] sm:$0xe] }
  0x1f   : > { %v2388_v4 = vrot.slane %v469_v3, 9  ;;  %v506_v5 = vrot.slane %v203_v1, 5  ;;  %v509_v6 = vrot.slane %v234_v2, 5  ;;  %v206_v7 = vld [vmem:[%s3174_s10 + $0x18] sm:$0xf]  ;;  %v255_v8 = vshll.u32 %v203_v1, 16 }
  0x20   : > { %v3185_v9 = vld [vmem:[%s3174_s10 + $0x1c] sm:$0xf]  ;;  %v3188_v10 = vld [vmem:[%s3174_s10 + $0x20] sm:$0x1]  ;;  %v294_v11 = vshrl.u32 %v206_v7, 16  ;;  %v297_v12 = vshll.u32 %v206_v7, 16 }
  0x21   : > { %v507_v13 = vsel %vm3176_vm2, %v2388_v4, %v506_v5  ;;  %v508_v14 = vrot.slane %v506_v5, 4  ;;  %v303_v15 = vshll.u32 %v3185_v9, 16  ;;  %v307_v16 = vshrl.u32 %v3185_v9, 16  ;;  %v202_v17 = vld [vmem:[%s3174_s10] sm:$0xf] }
  0x22   : > { %v576_v18 = vunpack.c.l.bf16 %v507_v13  ;;  %v296_v19 = vrot.slane %v294_v11, 4  ;;  %v299_v20 = vrot.slane %v297_v12, 5  ;;  %v313_v21 = vshll.u32 %v3188_v10, 16  ;;  %v210_v30 = vld [vmem:[%s3174_s10 + $0x30] sm:$0xf] }
  0x23   : > { %v510_v22 = vsel %vm3176_vm2, %v508_v14, %v509_v6  ;;  %v305_v23 = vrot.slane %v303_v15, 5  ;;  %v309_v24 = vrot.slane %v307_v16, 4  ;;  %v246_v25 = vshrl.u32 %v202_v17, 16  ;;  %v3206_v36 = vld [vmem:[%s3174_s10 + $0x34] sm:$0xf] }
  0x24   : > { %v577_v26 = vunpack.c.l.bf16 %v510_v22  ;;  %v300_v27 = vor.u32 %v299_v20, %v296_v19  ;;  %v315_v28 = vrot.slane %v313_v21, 5  ;;  %v249_v29 = vshll.u32 %v202_v17, 16  ;;  %v3212_v48 = vld [vmem:[%s3174_s10 + $0x38] sm:$0x1]  ;;  %v208_v50 = vld [vmem:[%s3174_s10 + $0x24] sm:$0xf] }
  0x25   : > { %v310_v32 = vor.u32 %v309_v24, %v305_v23  ;;  %v248_v33 = vrot.slane %v246_v25, 4  ;;  %v257_v34 = vrot.slane %v255_v8, 5  ;;  %v259_v35 = vshrl.u32 %v203_v1, 16  ;;  %v3223_v3 = vld [vmem:[%s3174_s10 + $0x28] sm:$0xf] }
  0x26   : > { %v2605_v37 = vpack.i.bf16 %v577_v26, %v576_v18  ;;  %v301_v38 = vrot.slane %v300_v27, 4  ;;  %v251_v39 = vrot.slane %v249_v29, 5  ;;  %v265_v40 = vshll.u32 %v234_v2, 16  ;;  %v3226_v4 = vld [vmem:[%s3174_s10 + $0x2c] sm:$0x1] }
  0x27   : > { %v311_v41 = vrot.slane %v310_v32, 4  ;;  %v261_v42 = vrot.slane %v259_v35, 4  ;;  %v342_v43 = vshrl.u32 %v210_v30, 16  ;;  %v345_v44 = vshll.u32 %v210_v30, 16  ;;  %v204_v12 = vld [vmem:[%s3174_s10 + $0xc] sm:$0xf] }
  0x28   : > { %2606 = vrot.lane.b32.xlu2 %v2605_v37, %s3068_s11  ;;  %v306_v45 = vsel %vm3201_vm5, %v301_v38, %v305_v23  ;;  %v252_v46 = vor.u32 %v251_v39, %v248_v33  ;;  %v267_v47 = vrot.slane %v265_v40, 5  ;;  %v351_v49 = vshll.u32 %v3206_v36, 16  ;;  %v3238_v24 = vld [vmem:[%s3174_s10 + $0x10] sm:$0xf]  ;;  %v3241_v30 = vld [vmem:[%s3174_s10 + $0x14] sm:$0x1] }
  0x29   : > { %v316_v51 = vsel %vm3201_vm5, %v311_v41, %v315_v28  ;;  %v457_v52 = vunpack.c.l.bf16 %v306_v45  ;;  %v262_v53 = vor.u32 %v261_v42, %v257_v34  ;;  %v344_v54 = vrot.slane %v342_v43, 4  ;;  %v3249_v41 = vld [vmem:[%s3174_s10 + $0x3c] sm:$0xf] }
  0x2a   : > { %v458_v55 = vunpack.c.l.bf16 %v316_v51  ;;  %v253_v56 = vrot.slane %v252_v46, 4  ;;  %v347_v57 = vrot.slane %v345_v44, 5  ;;  %v353_v58 = vrot.slane %v351_v49, 5  ;;  %v3255_v46 = vld [vmem:[%s3174_s10 + $0x40] sm:$0xf] }
  0x2b   : > { %v263_v59 = vrot.slane %v262_v53, 4  ;;  %v355_v60 = vshrl.u32 %v3206_v36, 16  ;;  %v361_v61 = vshll.u32 %v3212_v48, 16  ;;  %v318_v62 = vshrl.u32 %v208_v50, 16 }
  0x2c   : > { %v2620_v63 = vpack.i.bf16 %v458_v55, %v457_v52  ;;  %v258_v1 = vsel %vm3201_vm5, %v253_v56, %v257_v34  ;;  %v348_v2 = vor.u32 %v347_v57, %v344_v54  ;;  %v321_v5 = vshll.u32 %v208_v50, 16  ;;  %v3258_v55 = vld [vmem:[%s3174_s10 + $0x44] sm:$0x1] }
  0x2d   : > { %v268_v6 = vsel %vm3201_vm5, %v263_v59, %v267_v47  ;;  %v453_v7 = vunpack.c.l.bf16 %v258_v1  ;;  %v357_v8 = vrot.slane %v355_v60, 4  ;;  %v363_v11 = vrot.slane %v361_v61, 5  ;;  %v216_v61 = vld [vmem:[%s3174_s10 + $0x54] sm:$0xf] }
  0x2e   : > { %2621 = vrot.lane.b32.xlu1 %v2620_v63, %s3069_s20  ;;  %v454_v13 = vunpack.c.l.bf16 %v268_v6  ;;  %v349_v14 = vrot.slane %v348_v2, 4  ;;  %v320_v15 = vrot.slane %v318_v62, 4  ;;  %v323_v16 = vrot.slane %v321_v5, 5 }
  0x2f   : > { %v358_v17 = vor.u32 %v357_v8, %v353_v58  ;;  %v327_v18 = vshll.u32 %v3223_v3, 16  ;;  %v331_v19 = vshrl.u32 %v3223_v3, 16  ;;  %v337_v20 = vshll.u32 %v3226_v4, 16 }
  0x30   : > { %v2610_v21 = vpack.i.bf16 %v454_v13, %v453_v7  ;;  %v354_v22 = vsel %vm3201_vm5, %v349_v14, %v353_v58  ;;  %v324_v23 = vor.u32 %v323_v16, %v320_v15  ;;  %v270_v25 = vshrl.u32 %v204_v12, 16  ;;  %v3272_v14 = vld [vmem:[%s3174_s10 + $0x58] sm:$0xf]  ;;  %v3275_v15 = vld [vmem:[%s3174_s10 + $0x5c] sm:$0x1] }
  0x31   : > { %v359_v26 = vrot.slane %v358_v17, 4  ;;  %v461_v27 = vunpack.c.l.bf16 %v354_v22  ;;  %v329_v28 = vrot.slane %v327_v18, 5  ;;  %v333_v29 = vrot.slane %v331_v19, 4 }
  0x32   : > { %2611 = vrot.lane.b32.xlu0 %v2610_v21, %s3069_s20  ;;  %v325_v32 = vrot.slane %v324_v23, 4  ;;  %v339_v33 = vrot.slane %v337_v20, 5  ;;  %v272_v34 = vrot.slane %v270_v25, 4  ;;  %v273_v35 = vshll.u32 %v204_v12, 16  ;;  %v214_v21 = vld [vmem:[%s3174_s10 + $0x48] sm:$0xf] }
  0x33   : > { %v364_v37 = vsel %vm3201_vm5, %v359_v26, %v363_v11  ;;  %v334_v38 = vor.u32 %v333_v29, %v329_v28  ;;  %v279_v39 = vshll.u32 %v3238_v24, 16  ;;  %v283_v40 = vshrl.u32 %v3238_v24, 16 }
  0x34   : > { %v462_v42 = vunpack.c.l.bf16 %v364_v37  ;;  %v330_v43 = vsel %vm3201_vm5, %v325_v32, %v329_v28  ;;  %v275_v44 = vrot.slane %v273_v35, 5  ;;  %v289_v45 = vshll.u32 %v3241_v30, 16 }
  0x35   : > { %v335_v47 = vrot.slane %v334_v38, 4  ;;  %v459_v49 = vunpack.c.l.bf16 %v330_v43  ;;  %v281_v50 = vrot.slane %v279_v39, 5  ;;  %v285_v51 = vrot.slane %v283_v40, 4  ;;  %v3288_v38 = vld [vmem:[%s3174_s10 + $0x50] sm:$0x1] }
  0x36   : > { %v2630_v52 = vpack.i.bf16 %v462_v42, %v461_v27  ;;  %v276_v53 = vor.u32 %v275_v44, %v272_v34  ;;  %v291_v54 = vrot.slane %v289_v45, 5  ;;  %v366_v56 = vshrl.u32 %v3249_v41, 16  ;;  %v472_v45 = vld [vmem:[%s3174_s10 + $0x24] sm:$0xe] }
  0x37   : > { %v340_v57 = vsel %vm3201_vm5, %v335_v47, %v339_v33  ;;  %v286_v58 = vor.u32 %v285_v51, %v281_v50  ;;  %v369_v59 = vshll.u32 %v3249_v41, 16  ;;  %v375_v60 = vshll.u32 %v3255_v46, 16  ;;  %v3285_v33 = vld [vmem:[%s3174_s10 + $0x4c] sm:$0xf] }
  0x38   : > { %2631 = vrot.lane.b32.xlu2 %v2630_v52, %s3069_s20  ;;  %v460_v62 = vunpack.c.l.bf16 %v340_v57  ;;  %v277_v63 = vrot.slane %v276_v53, 4  ;;  %v368_v1 = vrot.slane %v366_v56, 4  ;;  %v379_v2 = vshrl.u32 %v3255_v46, 16 }
  0x39   : > { %v287_v5 = vrot.slane %v286_v58, 4  ;;  %v371_v6 = vrot.slane %v369_v59, 5  ;;  %v377_v7 = vrot.slane %v375_v60, 5  ;;  %v385_v8 = vshll.u32 %v3258_v55, 16 }
  0x3a   : > { %v2625_v11 = vpack.i.bf16 %v460_v62, %v459_v49  ;;  %v282_v12 = vsel %vm3201_vm5, %v277_v63, %v281_v50  ;;  %v381_v13 = vrot.slane %v379_v2, 4  ;;  %v414_v16 = vshrl.u32 %v216_v61, 16 }
  0x3b   : > { %v292_v17 = vsel %vm3201_vm5, %v287_v5, %v291_v54  ;;  %v455_v18 = vunpack.c.l.bf16 %v282_v12  ;;  %v372_v19 = vor.u32 %v371_v6, %v368_v1  ;;  %v387_v20 = vrot.slane %v385_v8, 5  ;;  %v471_v8 = vld [vmem:[%s3174_s10 + $0x18] sm:$0xe] }
  0x3c   : > { %2626 = vrot.lane.b32.xlu1 %v2625_v11, %s3069_s20  ;;  %v456_v22 = vunpack.c.l.bf16 %v292_v17  ;;  %v382_v23 = vor.u32 %v381_v13, %v377_v7  ;;  %v416_v25 = vrot.slane %v414_v16, 4  ;;  %v417_v26 = vshll.u32 %v216_v61, 16 }
  0x3d   : > { %v373_v27 = vrot.slane %v372_v19, 4  ;;  %v423_v28 = vshll.u32 %v3272_v14, 16  ;;  %v427_v29 = vshrl.u32 %v3272_v14, 16  ;;  %v433_v32 = vshll.u32 %v3275_v15, 16 }
  0x3e   : > { %v2615_v34 = vpack.i.bf16 %v456_v22, %v455_v18  ;;  %v383_v35 = vrot.slane %v382_v23, 4  ;;  %v419_v37 = vrot.slane %v417_v26, 5  ;;  %v390_v39 = vshrl.u32 %v214_v21, 16 }
  0x3f   : > { %v378_v40 = vsel %vm3201_vm5, %v373_v27, %v377_v7  ;;  %v425_v42 = vrot.slane %v423_v28, 5  ;;  %v429_v43 = vrot.slane %v427_v29, 4  ;;  %v435_v44 = vrot.slane %v433_v32, 5 }
  0x40   : > { %2616 = vrot.lane.b32.xlu0 %v2615_v34, %s3069_s20  ;;  %v388_v47 = vsel %vm3201_vm5, %v383_v35, %v387_v20  ;;  %v463_v49 = vunpack.c.l.bf16 %v378_v40  ;;  %v420_v50 = vor.u32 %v419_v37, %v416_v25  ;;  %v392_v51 = vrot.slane %v390_v39, 4  ;;  %v470_v25 = vld [vmem:[%s3174_s10 + $0xc] sm:$0xe]  ;;  %v475_v37 = vld [vmem:[%s3174_s10 + $0x48] sm:$0xe] }
  0x41   : > { %v464_v52 = vunpack.c.l.bf16 %v388_v47  ;;  %v430_v53 = vor.u32 %v429_v43, %v425_v42  ;;  %v393_v54 = vshll.u32 %v214_v21, 16  ;;  %v399_v56 = vshll.u32 %v3285_v33, 16 }
  0x42   : > { %v421_v57 = vrot.slane %v420_v50, 4  ;;  %v403_v58 = vshrl.u32 %v3285_v33, 16  ;;  %v409_v59 = vshll.u32 %v3288_v38, 16  ;;  %v2391_v60 = vrot.slane %v472_v45, 9 }
  0x43   : > { %v2635_v61 = vpack.i.bf16 %v464_v52, %v463_v49  ;;  %v431_v62 = vrot.slane %v430_v53, 4  ;;  %v395_v63 = vrot.slane %v393_v54, 5  ;;  %v401_v1 = vrot.slane %v399_v56, 5  ;;  %v474_v52 = vld [vmem:[%s3174_s10 + $0x3c] sm:$0xe] }
  0x44   : > { %v426_v2 = vsel %vm3201_vm5, %v421_v57, %v425_v42  ;;  %v405_v5 = vrot.slane %v403_v58, 4  ;;  %v411_v6 = vrot.slane %v409_v59, 5  ;;  %v527_v7 = vrot.slane %v3223_v3, 5  ;;  %v473_v58 = vld [vmem:[%s3174_s10 + $0x30] sm:$0xe] }
  0x45   : > { %2636 = vrot.lane.b32.xlu2 %v2635_v61, %s3069_s20  ;;  %v436_v11 = vsel %vm3201_vm5, %v431_v62, %v435_v44  ;;  %v467_v12 = vunpack.c.l.bf16 %v426_v2  ;;  %v396_v13 = vor.u32 %v395_v63, %v392_v51  ;;  %v530_v16 = vrot.slane %v3226_v4, 5 }
  0x46   : > { %v468_v17 = vunpack.c.l.bf16 %v436_v11  ;;  %v406_v18 = vor.u32 %v405_v5, %v401_v1  ;;  %v528_v19 = vsel %vm3176_vm2, %v2391_v60, %v527_v7  ;;  %v529_v20 = vrot.slane %v527_v7, 4 }
  0x47   : > { %v397_v21 = vrot.slane %v396_v13, 4  ;;  %v582_v22 = vunpack.c.l.bf16 %v528_v19  ;;  %v2390_v3 = vrot.slane %v471_v8, 9  ;;  %v520_v23 = vrot.slane %v3185_v9, 5 }
  0x48   : > { %v2650_v26 = vpack.i.bf16 %v468_v17, %v467_v12  ;;  %v407_v27 = vrot.slane %v406_v18, 4  ;;  %v531_v28 = vsel %vm3176_vm2, %v529_v20, %v530_v16  ;;  %v523_v4 = vrot.slane %v3188_v10, 5  ;;  %v3348_v16 = vld [vmem:[%s3174_s10 + $0x18] sm:$0xf]  ;;  %v3351_v17 = vld [vmem:[%s3174_s10 + $0x1c] sm:$0xf] }
  0x49   : > { %v402_v29 = vsel %vm3201_vm5, %v397_v21, %v401_v1  ;;  %v583_v32 = vunpack.c.l.bf16 %v531_v28  ;;  %v521_v34 = vsel %vm3176_vm2, %v2390_v3, %v520_v23  ;;  %v522_v35 = vrot.slane %v520_v23, 4  ;;  %v476_v23 = vld [vmem:[%s3174_s10 + $0x54] sm:$0xe]  ;;  %v2398_v28 = vld [vmem:[%s3174_s10 + $0xc] sm:$0xf] }
  0x4a   : > { %2651 = vrot.lane.b32.xlu1 %v2650_v26, %s3069_s20  ;;  %v412_v9 = vsel %vm3201_vm5, %v407_v27, %v411_v6  ;;  %v465_v39 = vunpack.c.l.bf16 %v402_v29  ;;  %v580_v40 = vunpack.c.l.bf16 %v521_v34  ;;  %v2389_v42 = vrot.slane %v470_v25, 9 }
  0x4b   : > { %v466_v10 = vunpack.c.l.bf16 %v412_v9  ;;  %v2660_v43 = vpack.i.bf16 %v583_v32, %v582_v22  ;;  %v524_v44 = vsel %vm3176_vm2, %v522_v35, %v523_v4  ;;  %v513_v45 = vrot.slane %v3238_v24, 5  ;;  %v3366_v4 = vld [vmem:[%s3174_s10 + $0x10] sm:$0xf]  ;;  %v3372_v9 = vld [vmem:[%s3174_s10 + $0x40] sm:$0xf] }
  0x4c   : > { %v581_v47 = vunpack.c.l.bf16 %v524_v44  ;;  %v516_v49 = vrot.slane %v3241_v30, 5  ;;  %v2394_v50 = vrot.slane %v475_v37, 9  ;;  %v548_v51 = vrot.slane %v3285_v33, 5  ;;  %v2406_v37 = vld [vmem:[%s3174_s10 + $0x3c] sm:$0xf] }
  0x4d   : > { %v2640_v53 = vpack.i.bf16 %v466_v10, %v465_v39  ;;  %2661 = vrot.lane.b32.xlu2 %v2660_v43, %s3068_s11  ;;  %v514_v54 = vsel %vm3176_vm2, %v2389_v42, %v513_v45  ;;  %v515_v56 = vrot.slane %v513_v45, 4  ;;  %v551_v57 = vrot.slane %v3288_v38, 5  ;;  %v3383_v45 = vld [vmem:[%s3174_s10 + $0x30] sm:$0xf] }
  0x4e   : > { %v2655_v59 = vpack.i.bf16 %v581_v47, %v580_v40  ;;  %v578_v60 = vunpack.c.l.bf16 %v514_v54  ;;  %v549_v24 = vsel %vm3176_vm2, %v2394_v50, %v548_v51  ;;  %v550_v30 = vrot.slane %v548_v51, 4  ;;  %v3386_v47 = vld [vmem:[%s3174_s10 + $0x34] sm:$0xf]  ;;  %v3392_v54 = vld [vmem:[%s3174_s10 + $0x28] sm:$0xf] }
  0x4f   : > { %2641 = vrot.lane.b32.xlu0 %v2640_v53, %s3069_s20  ;;  %v517_v33 = vsel %vm3176_vm2, %v515_v56, %v516_v49  ;;  %v588_v61 = vunpack.c.l.bf16 %v549_v24  ;;  %v2393_v62 = vrot.slane %v474_v52, 9  ;;  %v541_v63 = vrot.slane %v3255_v46, 5  ;;  %v2402_v49 = vld [vmem:[%s3174_s10 + $0x24] sm:$0xf]  ;;  %s2502_s20 = sshll.u32 %s3054_s16, 1 }
  0x50   : > { %v579_v1 = vunpack.c.l.bf16 %v517_v33  ;;  %v552_v38 = vsel %vm3176_vm2, %v550_v30, %v551_v57  ;;  %v544_v2 = vrot.slane %v3258_v55, 5  ;;  %v2392_v5 = vrot.slane %v473_v58, 9  ;;  %v2413_v24 = vld [vmem:[%s3174_s10 + $0x64] sm:$0xf] }
  0x51   : > { %v589_v6 = vunpack.c.l.bf16 %v552_v38  ;;  %v542_v7 = vsel %vm3176_vm2, %v2393_v62, %v541_v63  ;;  %v543_v8 = vrot.slane %v541_v63, 4  ;;  %v534_v11 = vrot.slane %v3206_v36, 5  ;;  %v3402_v63 = vld [vmem:[%s3174_s10 + $0x54] sm:$0xf] }
  0x52   : > { %2656 = vrot.lane.b32.xlu1 %v2655_v59, %s3068_s11  ;;  %v586_v12 = vunpack.c.l.bf16 %v542_v7  ;;  %v537_v13 = vrot.slane %v3212_v48, 5  ;;  %v2645_v55 = vpack.i.bf16 %v579_v1, %v578_v60  ;;  %v614_v22 = vunpack.c.l.bf16 %v3348_v16  ;;  %v3396_v60 = vld [vmem:[%s3174_s10 + $0x60] sm:$0xf]  ;;  %v3405_v1 = vld [vmem:[%s3174_s10 + $0x58] sm:$0xf] }
  0x53   : > { %v2675_v18 = vpack.i.bf16 %v589_v6, %v588_v61  ;;  %v545_v19 = vsel %vm3176_vm2, %v543_v8, %v544_v2  ;;  %v536_v20 = vrot.slane %v534_v11, 4  ;;  %v535_v36 = vsel %vm3176_vm2, %v2392_v5, %v534_v11 }
  0x54   : > { %v587_v21 = vunpack.c.l.bf16 %v545_v19  ;;  %v615_v3 = vunpack.c.l.bf16 %v3351_v17  ;;  %v584_v26 = vunpack.c.l.bf16 %v535_v36  ;;  %v2395_v29 = vrot.slane %v476_v23, 9  ;;  %v3415_v19 = vld [vmem:[%s3174_s10 + $0x48] sm:$0xf] }
  0x55   : > { %2676 = vrot.lane.b32.xlu2 %v2675_v18, %s3068_s11  ;;  %v538_v48 = vsel %vm3176_vm2, %v536_v20, %v537_v13  ;;  %v555_v32 = vrot.slane %v3272_v14, 5  ;;  %v558_v34 = vrot.slane %v3275_v15, 5  ;;  %v612_v39 = vunpack.c.l.bf16 %v2398_v28 }
  0x56   : > { %v2670_v25 = vpack.i.bf16 %v587_v21, %v586_v12  ;;  %v585_v27 = vunpack.c.l.bf16 %v538_v48  ;;  %v2690_v35 = vpack.i.bf16 %v615_v3, %v614_v22  ;;  %v613_v40 = vunpack.c.l.bf16 %v3366_v4  ;;  %v2440_v22 = vld [vmem:[%s3174_s10 + $0x18] sm:$0xf] }
  0x57   : > { %2646 = vrot.lane.b32.xlu0 %v2645_v55, %s3068_s11  ;;  %v557_v42 = vrot.slane %v555_v32, 4  ;;  %v556_v14 = vsel %vm3176_vm2, %v2395_v29, %v555_v32  ;;  %v620_v43 = vunpack.c.l.bf16 %v2406_v37  ;;  %v621_v44 = vunpack.c.l.bf16 %v3372_v9 }
  0x58   : > { %v2665_v10 = vpack.i.bf16 %v585_v27, %v584_v26  ;;  %v661_v50 = vshrl.u32 %v3348_v16, 16  ;;  %v664_v51 = vshll.u32 %v3348_v16, 16  ;;  %v637_v52 = vshrl.u32 %v2398_v28, 16  ;;  %v3427_v27 = vld [vmem:[%s3174_s10 + $0x1c] sm:$0xf] }
  0x59   : > { %v559_v15 = vsel %vm3176_vm2, %v557_v42, %v558_v34  ;;  %v2685_v53 = vpack.i.bf16 %v613_v40, %v612_v39  ;;  %v640_v56 = vshll.u32 %v2398_v28, 16  ;;  %v590_v57 = vunpack.c.l.bf16 %v556_v14  ;;  %v2422_v28 = vld [vmem:[%s3174_s10 + $0xc] sm:$0xe] }
  0x5a   : > { %2671 = vrot.lane.b32.xlu1 %v2670_v25, %s3068_s11  ;;  %v591_v58 = vunpack.c.l.bf16 %v559_v15  ;;  %v733_v59 = vshrl.u32 %v2406_v37, 16  ;;  %v736_v30 = vshll.u32 %v2406_v37, 16  ;;  %v2705_v33 = vpack.i.bf16 %v621_v44, %v620_v43  ;;  %v3436_v14 = vld [vmem:[%s3174_s10 + $0x4c] sm:$0xf] }
  0x5b   : > { %v618_v61 = vunpack.c.l.bf16 %v3383_v45  ;;  %v619_v62 = vunpack.c.l.bf16 %v3386_v47  ;;  %v616_v38 = vunpack.c.l.bf16 %v2402_v49  ;;  %v617_v2 = vunpack.c.l.bf16 %v3392_v54 }
  0x5c   : > { %v685_v5 = vshrl.u32 %v2402_v49, 16  ;;  %v688_v6 = vshll.u32 %v2402_v49, 16  ;;  %v3408_v7 = vrot.slane %v661_v50, 4  ;;  %v639_v8 = vrot.slane %v637_v52, 4 }
  0x5d   : > { %2691 = vrot.lane.b32.xlu2 %v2690_v35, %s3070_s21  ;;  %v626_v11 = vunpack.c.l.bf16 %v3396_v60  ;;  %v627_v12 = vunpack.c.l.bf16 %v2413_v24  ;;  %v642_v13 = vrot.slane %v640_v56, 5  ;;  %v2680_v16 = vpack.i.bf16 %v591_v58, %v590_v57  ;;  %v2414_v35 = vld [vmem:[%s3174_s10 + $0x14] sm:$0x1]  ;;  %v3442_v56 = vld [vmem:[%s3174_s10 + $0x2c] sm:$0x1] }
  0x5e   : > { %v624_v55 = vunpack.c.l.bf16 %v3402_v63  ;;  %v625_v18 = vunpack.c.l.bf16 %v3405_v1  ;;  %v3417_v20 = vrot.slane %v664_v51, 5  ;;  %v3419_v21 = vrot.slane %v733_v59, 4 }
  0x5f   : > { %2666 = vrot.lane.b32.xlu0 %v2665_v10, %s3068_s11  ;;  %v3421_v36 = vrot.slane %v736_v30, 5  ;;  %v709_v48 = vshrl.u32 %v3383_v45, 16  ;;  %v2700_v3 = vpack.i.bf16 %v619_v62, %v618_v61  ;;  %v687_v23 = vrot.slane %v685_v5, 4 }
  0x60   : > { %v690_v25 = vrot.slane %v688_v6, 5  ;;  %v2695_v26 = vpack.i.bf16 %v617_v2, %v616_v38  ;;  %v2720_v29 = vpack.i.bf16 %v627_v12, %v626_v11  ;;  %v781_v32 = vshrl.u32 %v3402_v63, 16 }
  0x61   : > { %v622_v34 = vunpack.c.l.bf16 %v3415_v19  ;;  %v894_v37 = vrot.slane %v3366_v4, 5  ;;  %v2715_v39 = vpack.i.bf16 %v625_v18, %v624_v55  ;;  %v1000_v40 = vunpack.c.l.bf16 %v2440_v22 }
  0x62   : > { %2686 = vrot.lane.b32.xlu1 %v2685_v53, %s3070_s21  ;;  %v1025_v42 = vshrl.u32 %v2440_v22, 16  ;;  %v643_v10 = vor.u32 %v642_v13, %v639_v8  ;;  %v1001_v15 = vunpack.c.l.bf16 %v3427_v27  ;;  %v1028_v43 = vshll.u32 %v2440_v22, 16  ;;  %v2464_v13 = vld [vmem:[%s3174_s10 + $0x18] sm:$0xe] }
  0x63   : > { %v2430_v44 = vrot.slane %v2422_v28, 9  ;;  %v646_v49 = vshll.u32 %v3366_v4, 16  ;;  %v896_v50 = vrot.slane %v894_v37, 4  ;;  %v897_v51 = vrot.slane %v2414_v35, 5 }
  0x64   : > { %v650_v52 = vshrl.u32 %v3366_v4, 16  ;;  %v656_v53 = vshll.u32 %v2414_v35, 16  ;;  %v644_v57 = vrot.slane %v643_v10, 4  ;;  %v691_v59 = vor.u32 %v690_v25, %v687_v23 }
  0x65   : > { %2706 = vrot.lane.b32.xlu2 %v2705_v33, %s3070_s21  ;;  %v648_v58 = vrot.slane %v646_v49, 5  ;;  %v694_v24 = vshll.u32 %v3392_v54, 16  ;;  %v623_v30 = vunpack.c.l.bf16 %v3436_v14  ;;  %v1027_v33 = vrot.slane %v1025_v42, 4 }
  0x66   : > { %v652_v61 = vrot.slane %v650_v52, 4  ;;  %v698_v62 = vshrl.u32 %v3392_v54, 16  ;;  %v2735_v38 = vpack.i.bf16 %v1001_v15, %v1000_v40  ;;  %v692_v2 = vrot.slane %v691_v59, 4 }
  0x67   : > { %2681 = vrot.lane.b32.xlu0 %v2680_v16, %s3068_s11  ;;  %v696_v4 = vrot.slane %v694_v24, 5  ;;  %v704_v5 = vshll.u32 %v3442_v56, 16  ;;  %v1030_v6 = vrot.slane %v1028_v43, 5  ;;  %v658_v11 = vrot.slane %v656_v53, 5 }
  0x68   : > { %v653_v8 = vor.u32 %v652_v61, %v648_v58  ;;  %v700_v12 = vrot.slane %v698_v62, 4  ;;  %v895_v16 = vsel %vm3176_vm2, %v2430_v44, %v894_v37  ;;  %v898_v55 = vsel %vm3176_vm2, %v896_v50, %v897_v51 }
  0x69   : > { %v649_v18 = vsel %vm3201_vm5, %v644_v57, %v648_v58  ;;  %v1282_v22 = vrot.slane %v3427_v27, 5  ;;  %v697_v23 = vsel %vm3201_vm5, %v692_v2, %v696_v4  ;;  %v706_v28 = vrot.slane %v704_v5, 5  ;;  %v3477_v2 = vld [vmem:[%s3174_s10 + $0x44] sm:$0x1] }
  0x6a   : > { %2701 = vrot.lane.b32.xlu1 %v2700_v3, %s3070_s21  ;;  %v654_v3 = vrot.slane %v653_v8, 4  ;;  %v701_v25 = vor.u32 %v700_v12, %v696_v4  ;;  %v2472_v35 = vrot.slane %v2464_v13, 9  ;;  %v1034_v42 = vshll.u32 %v3427_v27, 16 }
  0x6b   : > { %v1284_v40 = vrot.slane %v1282_v22, 4  ;;  %v1031_v43 = vor.u32 %v1030_v6, %v1027_v33  ;;  %v1038_v44 = vshrl.u32 %v3427_v27, 16  ;;  %v964_v49 = vunpack.c.l.bf16 %v895_v16 }
  0x6c   : > { %v659_v10 = vsel %vm3201_vm5, %v654_v3, %v658_v11  ;;  %v702_v15 = vrot.slane %v701_v25, 4  ;;  %v965_v50 = vunpack.c.l.bf16 %v898_v55  ;;  %v1036_v51 = vrot.slane %v1034_v42, 5  ;;  %v2424_v3 = vld [vmem:[%s3174_s10 + $0x24] sm:$0xe] }
  0x6d   : > { %2721 = vrot.lane.b32.xlu2 %v2720_v29, %s3070_s21  ;;  %v2456_v29 = vld [vmem:[%s3174_s10 + $0x20] sm:$0x1]  ;;  %v2710_v52 = vpack.i.bf16 %v623_v30, %v622_v34  ;;  %v1040_v57 = vrot.slane %v1038_v44, 4  ;;  %v844_v59 = vunpack.c.l.bf16 %v649_v18  ;;  %v845_v24 = vunpack.c.l.bf16 %v659_v10  ;;  %v2444_v30 = vld [vmem:[%s3174_s10 + $0x30] sm:$0xf] }
  0x6e   : > { %v1285_v37 = vrot.slane %v2456_v29, 5  ;;  %v707_v53 = vsel %vm3201_vm5, %v702_v15, %v706_v28  ;;  %v1044_v58 = vshll.u32 %v2456_v29, 16  ;;  %v848_v33 = vunpack.c.l.bf16 %v697_v23  ;;  %v3489_v28 = vld [vmem:[%s3174_s10 + $0x34] sm:$0xf] }
  0x6f   : > { %2696 = vrot.lane.b32.xlu0 %v2695_v26, %s3070_s21  ;;  %v784_v26 = vshll.u32 %v3402_v63, 16  ;;  %v1283_v27 = vsel %vm3176_vm2, %v2472_v35, %v1282_v22  ;;  %v1032_v62 = vrot.slane %v1031_v43, 4  ;;  %v1041_v34 = vor.u32 %v1040_v57, %v1036_v51 }
  0x70   : > { %v1286_v61 = vsel %vm3176_vm2, %v1284_v40, %v1285_v37  ;;  %v2730_v4 = vpack.i.bf16 %v965_v50, %v964_v49  ;;  %v1046_v5 = vrot.slane %v1044_v58, 5  ;;  %v1073_v6 = vshrl.u32 %v2444_v30, 16 }
  0x71   : > { %v1076_v8 = vshll.u32 %v2444_v30, 16  ;;  %v1042_v11 = vrot.slane %v1041_v34, 4  ;;  %v742_v12 = vshll.u32 %v3372_v9, 16  ;;  %v746_v13 = vshrl.u32 %v3372_v9, 16 }
  0x72   : > { %2716 = vrot.lane.b32.xlu1 %v2715_v39, %s3070_s21  ;;  %v849_v39 = vunpack.c.l.bf16 %v707_v53  ;;  %v2725_v16 = vpack.i.bf16 %v845_v24, %v844_v59  ;;  %v1352_v55 = vunpack.c.l.bf16 %v1283_v27  ;;  %v1353_v18 = vunpack.c.l.bf16 %v1286_v61  ;;  %v2448_v59 = vld [vmem:[%s3174_s10 + $0x48] sm:$0xf]  ;;  %v2449_v61 = vld [vmem:[%s3174_s10 + $0x4c] sm:$0xf] }
  0x73   : > { %v752_v22 = vshll.u32 %v3477_v2, 16  ;;  %v1037_v25 = vsel %vm3201_vm5, %v1032_v62, %v1036_v51  ;;  %v744_v29 = vrot.slane %v742_v12, 5  ;;  %v748_v35 = vrot.slane %v746_v13, 4  ;;  %v2468_v12 = vld [vmem:[%s3174_s10 + $0x48] sm:$0xe] }
  0x74   : > { %v2750_v23 = vpack.i.bf16 %v849_v39, %v848_v33  ;;  %v1078_v40 = vrot.slane %v1076_v8, 5  ;;  %v2432_v15 = vrot.slane %v2424_v3, 9  ;;  %v908_v43 = vrot.slane %v3392_v54, 5 }
  0x75   : > { %2736 = vrot.lane.b32.xlu2 %v2735_v38, %s3071_s24  ;;  %v739_v38 = vor.u32 %v3421_v36, %v3419_v21  ;;  %v1047_v21 = vsel %vm3201_vm5, %v1042_v11, %v1046_v5  ;;  %v1075_v36 = vrot.slane %v1073_v6, 4  ;;  %v749_v42 = vor.u32 %v748_v35, %v744_v29  ;;  %v2426_v5 = vld [vmem:[%s3174_s10 + $0x3c] sm:$0xe] }
  0x76   : > { %v754_v10 = vrot.slane %v752_v22, 5  ;;  %v3497_v44 = vrot.slane %v781_v32, 4  ;;  %v3499_v49 = vrot.slane %v784_v26, 5  ;;  %v1004_v50 = vunpack.c.l.bf16 %v2444_v30  ;;  %v3508_v32 = vld [vmem:[%s3174_s10 + $0x38] sm:$0x1] }
  0x77   : > { %2711 = vrot.lane.b32.xlu0 %v2710_v52, %s3070_s21  ;;  %v740_v37 = vrot.slane %v739_v38, 4  ;;  %v1005_v51 = vunpack.c.l.bf16 %v3489_v28  ;;  %v2745_v52 = vpack.i.bf16 %v1353_v18, %v1352_v55  ;;  %v1232_v53 = vunpack.c.l.bf16 %v1037_v25  ;;  %v2460_v22 = vld [vmem:[%s3174_s10 + $0x50] sm:$0x1] }
  0x78   : > { %v1233_v57 = vunpack.c.l.bf16 %v1047_v21  ;;  %v750_v58 = vrot.slane %v749_v42, 4  ;;  %v911_v63 = vrot.slane %v3442_v56, 5  ;;  %v1079_v26 = vor.u32 %v1078_v40, %v1075_v36 }
  0x79   : > { %v745_v54 = vsel %vm3201_vm5, %v740_v37, %v744_v29  ;;  %v1082_v24 = vshll.u32 %v3489_v28, 16  ;;  %v909_v27 = vsel %vm3176_vm2, %v2432_v15, %v908_v43  ;;  %v910_v39 = vrot.slane %v908_v43, 4 }
  0x7a   : > { %2731 = vrot.lane.b32.xlu1 %v2730_v4, %s3072_s27  ;;  %v755_v33 = vsel %vm3201_vm5, %v750_v58, %v754_v10  ;;  %v1121_v62 = vshrl.u32 %v2448_v59, 16  ;;  %v2765_v34 = vpack.i.bf16 %v1005_v51, %v1004_v50  ;;  %v1008_v56 = vunpack.c.l.bf16 %v2448_v59 }
  0x7b   : > { %v1124_v30 = vshll.u32 %v2448_v59, 16  ;;  %v1080_v4 = vrot.slane %v1079_v26, 4  ;;  %v2740_v6 = vpack.i.bf16 %v1233_v57, %v1232_v53  ;;  %v1084_v8 = vrot.slane %v1082_v24, 5 }
  0x7c   : > { %v1086_v11 = vshrl.u32 %v3489_v28, 16  ;;  %v1092_v38 = vshll.u32 %v3508_v32, 16  ;;  %v852_v13 = vunpack.c.l.bf16 %v745_v54  ;;  %v968_v55 = vunpack.c.l.bf16 %v909_v27 }
  0x7d   : > { %2751 = vrot.lane.b32.xlu2 %v2750_v23, %s3073_s28  ;;  %v1009_v18 = vunpack.c.l.bf16 %v2449_v61  ;;  %v912_v3 = vsel %vm3176_vm2, %v910_v39, %v911_v63  ;;  %v1123_v23 = vrot.slane %v1121_v62, 4  ;;  %v922_v29 = vrot.slane %v3372_v9, 5  ;;  %v2466_v39 = vld [vmem:[%s3174_s10 + $0x30] sm:$0xe] }
  0x7e   : > { %v1088_v25 = vrot.slane %v1086_v11, 4  ;;  %v1126_v35 = vrot.slane %v1124_v30, 5  ;;  %v1085_v21 = vsel %vm3201_vm5, %v1080_v4, %v1084_v8  ;;  %v2434_v36 = vrot.slane %v2426_v5, 9 }
  0x7f   : > { %2726 = vrot.lane.b32.xlu0 %v2725_v16, %s3073_s28  ;;  %v853_v16 = vunpack.c.l.bf16 %v755_v33  ;;  %v2476_v40 = vrot.slane %v2468_v12, 9  ;;  %v1094_v42 = vrot.slane %v1092_v38, 5  ;;  %v1310_v10 = vrot.slane %v2449_v61, 5 }
  0x80   : > { %v1089_v37 = vor.u32 %v1088_v25, %v1084_v8  ;;  %v1313_v15 = vrot.slane %v2460_v22, 5  ;;  %v969_v50 = vunpack.c.l.bf16 %v912_v3  ;;  %v2780_v51 = vpack.i.bf16 %v1009_v18, %v1008_v56 }
  0x81   : > { %v2760_v43 = vpack.i.bf16 %v853_v16, %v852_v13  ;;  %v1236_v53 = vunpack.c.l.bf16 %v1085_v21  ;;  %v924_v57 = vrot.slane %v922_v29, 4  ;;  %v1312_v58 = vrot.slane %v1310_v10, 4  ;;  %v3547_v16 = vld [vmem:[%s3174_s10 + $0x5c] sm:$0x1] }
  0x82   : > { %2746 = vrot.lane.b32.xlu1 %v2745_v52, %s3074_s29  ;;  %v925_v52 = vrot.slane %v3477_v2, 5  ;;  %v1090_v9 = vrot.slane %v1089_v37, 4  ;;  %v1311_v59 = vsel %vm3176_vm2, %v2476_v40, %v1310_v10  ;;  %v1127_v54 = vor.u32 %v1126_v35, %v1123_v23  ;;  %v3541_v4 = vpop.permute.xlu2 %2606  ;;  %v2423_v37 = vld [vmem:[%s3174_s10 + $0x18] sm:$0xe] }
  0x83   : > { %v1130_v63 = vshll.u32 %v2449_v61, 16  ;;  %v1134_v26 = vshrl.u32 %v2449_v61, 16  ;;  %v923_v33 = vsel %vm3176_vm2, %v2434_v36, %v922_v29  ;;  %v1314_v2 = vsel %vm3176_vm2, %v1312_v58, %v1313_v15 }
  0x84   : > { %v1095_v24 = vsel %vm3201_vm5, %v1090_v9, %v1094_v42  ;;  %v1140_v27 = vshll.u32 %v2460_v22, 16  ;;  %v2755_v62 = vpack.i.bf16 %v969_v50, %v968_v55  ;;  %v1128_v56 = vrot.slane %v1127_v54, 4  ;;  %v2415_v54 = vld [vmem:[%s3174_s10 + $0x20] sm:$0x1] }
  0x85   : > { %2766 = vrot.lane.b32.xlu2 %v2765_v34, %s3071_s24  ;;  %v1237_v34 = vunpack.c.l.bf16 %v1095_v24  ;;  %v1132_v30 = vrot.slane %v1130_v63, 5  ;;  %v1360_v61 = vunpack.c.l.bf16 %v1311_v59  ;;  %v1361_v5 = vunpack.c.l.bf16 %v1314_v2 }
  0x86   : > { %v1296_v8 = vrot.slane %v3489_v28, 5  ;;  %v926_v11 = vsel %vm3176_vm2, %v924_v57, %v925_v52  ;;  %v972_v38 = vunpack.c.l.bf16 %v923_v33  ;;  %v1142_v12 = vrot.slane %v1140_v27, 5 }
  0x87   : > { %2741 = vrot.lane.b32.xlu0 %v2740_v6, %s3075_s4  ;;  %v1136_v6 = vrot.slane %v1134_v26, 4  ;;  %v2474_v13 = vrot.slane %v2466_v39, 9  ;;  %v2775_v55 = vpack.i.bf16 %v1237_v34, %v1236_v53  ;;  %v1299_v3 = vrot.slane %v3508_v32, 5 }
  0x88   : > { %v1298_v22 = vrot.slane %v1296_v8, 4  ;;  %v1133_v23 = vsel %vm3201_vm5, %v1128_v56, %v1132_v30  ;;  %v787_v28 = vor.u32 %v3499_v49, %v3497_v44  ;;  %v790_v25 = vshll.u32 %v3405_v1, 16 }
  0x89   : > { %v1137_v18 = vor.u32 %v1136_v6, %v1132_v30  ;;  %v794_v29 = vshrl.u32 %v3405_v1, 16  ;;  %v973_v35 = vunpack.c.l.bf16 %v926_v11  ;;  %v2795_v21 = vpack.i.bf16 %v1361_v5, %v1360_v61  ;;  %v3579_v30 = vld [vmem:[%s3174_s10 + $0x24] sm:$0xf] }
  0x8a   : > { %2761 = vrot.lane.b32.xlu1 %v2760_v43, %s3073_s28  ;;  %v800_v40 = vshll.u32 %v3547_v16, 16  ;;  %v1297_v32 = vsel %vm3176_vm2, %v2474_v13, %v1296_v8  ;;  %v788_v42 = vrot.slane %v787_v28, 4  ;;  %v792_v10 = vrot.slane %v790_v25, 5  ;;  %v3596_v28 = vld [vmem:[%s3174_s10 + $0x2c] sm:$0x1] }
  0x8b   : > { %v1138_v36 = vrot.slane %v1137_v18, 4  ;;  %v796_v15 = vrot.slane %v794_v29, 4  ;;  %v1240_v49 = vunpack.c.l.bf16 %v1133_v23  ;;  %v1300_v43 = vsel %vm3176_vm2, %v1298_v22, %v1299_v3  ;;  %v2428_v29 = vld [vmem:[%s3174_s10 + $0x54] sm:$0xe] }
  0x8c   : > { %v802_v50 = vrot.slane %v800_v40, 5  ;;  %v793_v52 = vsel %vm3201_vm5, %v788_v42, %v792_v10  ;;  %v2431_v53 = vrot.slane %v2423_v37, 9  ;;  %v712_v57 = vshll.u32 %v3383_v45, 16 }
  0x8d   : > { %2781 = vrot.lane.b32.xlu2 %v2780_v51, %s3071_s24  ;;  %v1143_v44 = vsel %vm3201_vm5, %v1138_v36, %v1142_v12  ;;  %v797_v9 = vor.u32 %v796_v15, %v792_v10  ;;  %v2770_v58 = vpack.i.bf16 %v973_v35, %v972_v38  ;;  %v1356_v59 = vunpack.c.l.bf16 %v1297_v32 }
  0x8e   : > { %v1241_v51 = vunpack.c.l.bf16 %v1143_v44  ;;  %v901_v63 = vrot.slane %v3351_v17, 5  ;;  %v1357_v26 = vunpack.c.l.bf16 %v1300_v43  ;;  %v904_v33 = vrot.slane %v2415_v54, 5 }
  0x8f   : > { %2756 = vrot.lane.b32.xlu0 %v2755_v62, %s3072_s27  ;;  %v798_v24 = vrot.slane %v797_v9, 4  ;;  %v667_v2 = vor.u32 %v3417_v20, %v3408_v7  ;;  %v856_v62 = vunpack.c.l.bf16 %v793_v52  ;;  %v228_v34 = vunpack.c.l.bf16 %v3249_v41  ;;  %v3587_v20 = vld [vmem:[%s3174_s10 + $0x28] sm:$0xf] }
  0x90   : > { %v2790_v39 = vpack.i.bf16 %v1241_v51, %v1240_v49  ;;  %v903_v56 = vrot.slane %v901_v63, 4  ;;  %v902_v5 = vsel %vm3176_vm2, %v2431_v53, %v901_v63  ;;  %v670_v7 = vshll.u32 %v3351_v17, 16 }
  0x91   : > { %v803_v61 = vsel %vm3201_vm5, %v798_v24, %v802_v50  ;;  %v668_v6 = vrot.slane %v667_v2, 4  ;;  %v674_v11 = vshrl.u32 %v3351_v17, 16  ;;  %v680_v38 = vshll.u32 %v2415_v54, 16 }
  0x92   : > { %2776 = vrot.lane.b32.xlu1 %v2775_v55, %s3075_s4  ;;  %v3575_v27 = vpop.permute.xlu2 %2631  ;;  %v857_v8 = vunpack.c.l.bf16 %v803_v61  ;;  %v905_v41 = vsel %vm3176_vm2, %v903_v56, %v904_v33  ;;  %v2785_v12 = vpack.i.bf16 %v1357_v26, %v1356_v59  ;;  %v672_v13 = vrot.slane %v670_v7, 5 }
  0x93   : > { %v1049_v55 = vshrl.u32 %v3579_v30, 16  ;;  %v1052_v18 = vshll.u32 %v3579_v30, 16  ;;  %v966_v3 = vunpack.c.l.bf16 %v902_v5  ;;  %v676_v23 = vrot.slane %v674_v11, 4  ;;  %v3628_v11 = vld [vmem:[%s3174_s10 + $0x60] sm:$0xf] }
  0x94   : > { %v2810_v22 = vpack.i.bf16 %v857_v8, %v856_v62  ;;  %v1058_v25 = vshll.u32 %v3587_v20, 16  ;;  %v967_v35 = vunpack.c.l.bf16 %v905_v41  ;;  %v673_v40 = vsel %vm3201_vm5, %v668_v6, %v672_v13 }
  0x95   : > { %2796 = vrot.lane.b32.xlu2 %v2795_v21, %s3074_s29  ;;  %v682_v21 = vrot.slane %v680_v38, 5  ;;  %v1051_v17 = vrot.slane %v1049_v55, 4  ;;  %v1054_v36 = vrot.slane %v1052_v18, 5  ;;  %v677_v37 = vor.u32 %v676_v23, %v672_v13 }
  0x96   : > { %v1060_v32 = vrot.slane %v1058_v25, 5  ;;  %v1062_v42 = vshrl.u32 %v3587_v20, 16  ;;  %v1068_v15 = vshll.u32 %v3596_v28, 16  ;;  %v2436_v44 = vrot.slane %v2428_v29, 9  ;;  %v3646_v25 = vld [vmem:[%s3174_s10 + $0x68] sm:$0x1] }
  0x97   : > { %2771 = vrot.lane.b32.xlu0 %v2770_v58, %s3072_s27  ;;  %v1055_v10 = vor.u32 %v1054_v36, %v1051_v17  ;;  %v936_v49 = vrot.slane %v3405_v1, 5  ;;  %v229_v43 = vunpack.c.l.bf16 %v3255_v46  ;;  %v678_v50 = vrot.slane %v677_v37, 4 }
  0x98   : > { %v1064_v51 = vrot.slane %v1062_v42, 4  ;;  %v939_v52 = vrot.slane %v3547_v16, 5  ;;  %v2805_v9 = vpack.i.bf16 %v967_v35, %v966_v3  ;;  %v846_v63 = vunpack.c.l.bf16 %v673_v40  ;;  %v2465_v35 = vld [vmem:[%s3174_s10 + $0x24] sm:$0xe] }
  0x99   : > { %v1056_v53 = vrot.slane %v1055_v10, 4  ;;  %v937_v58 = vsel %vm3176_vm2, %v2436_v44, %v936_v49  ;;  %v938_v59 = vrot.slane %v936_v49, 4  ;;  %v683_v1 = vsel %vm3201_vm5, %v678_v50, %v682_v21 }
  0x9a   : > { %2791 = vrot.lane.b32.xlu1 %v2790_v39, %s3075_s4  ;;  %v1065_v26 = vor.u32 %v1064_v51, %v1060_v32  ;;  %v1070_v24 = vrot.slane %v1068_v15, 5  ;;  %v847_v2 = vunpack.c.l.bf16 %v683_v1  ;;  %v976_v56 = vunpack.c.l.bf16 %v937_v58 }
  0x9b   : > { %v1061_v16 = vsel %vm3201_vm5, %v1056_v53, %v1060_v32  ;;  %v940_v62 = vsel %vm3176_vm2, %v938_v59, %v939_v52  ;;  %v805_v38 = vshrl.u32 %v3396_v60, 16  ;;  %v3639_v18 = vrot.slane %v709_v48, 4  ;;  %v2425_v53 = vld [vmem:[%s3174_s10 + $0x30] sm:$0xe] }
  0x9c   : > { %v1066_v39 = vrot.slane %v1065_v26, 4  ;;  %v1234_v6 = vunpack.c.l.bf16 %v1061_v16  ;;  %v977_v7 = vunpack.c.l.bf16 %v940_v62  ;;  %v2800_v8 = vpack.i.bf16 %v847_v2, %v846_v63  ;;  %v2926_v2 = vld [vmem:[%s3174_s10 + $0x24] sm:$0xf]  ;;  %v2417_v62 = vld [vmem:[%s3174_s10 + $0x38] sm:$0x1] }
  0x9d   : > { %2811 = vrot.lane.b32.xlu2 %v2810_v22, %s3073_s28  ;;  %v3643_v22 = vrot.slane %v712_v57, 5  ;;  %v1169_v29 = vshrl.u32 %v3628_v11, 16  ;;  %v1002_v21 = vunpack.c.l.bf16 %v3579_v30  ;;  %v1003_v48 = vunpack.c.l.bf16 %v3587_v20 }
  0x9e   : > { %v1071_v41 = vsel %vm3201_vm5, %v1066_v39, %v1070_v24  ;;  %v2820_v23 = vpack.i.bf16 %v977_v7, %v976_v56  ;;  %v3656_v57 = vrot.slane %v805_v38, 4  ;;  %v1188_v10 = vshll.u32 %v3646_v25, 16  ;;  %v2927_v38 = vld [vmem:[%s3174_s10 + $0x1c] sm:$0xf] }
  0x9f   : > { %2786 = vrot.lane.b32.xlu0 %v2785_v12, %s3074_s29  ;;  %v2637_v54 = vpop.permute.xlu2 %2636  ;;  %v808_v12 = vshll.u32 %v3396_v60, 16  ;;  %v1235_v13 = vunpack.c.l.bf16 %v1071_v41  ;;  %v1172_v60 = vshll.u32 %v3628_v11, 16  ;;  %v1171_v40 = vrot.slane %v1169_v29, 4 }
  0xa0   : > { %v2639_v46 = vunpack.i.h.bf16 %v2637_v54  ;;  %v2638_v33 = vunpack.i.l.bf16 %v2637_v54  ;;  %v3632_v55 = vpop.permute.xlu1 %2621  ;;  %v2473_v30 = vrot.slane %v2465_v35, 9  ;;  %v757_v15 = vshrl.u32 %v3415_v19, 16 }
  0xa1   : > { %v2825_v3 = vpack.i.bf16 %v1235_v13, %v1234_v6  ;;  %v3658_v36 = vrot.slane %v808_v12, 5  ;;  %v1174_v37 = vrot.slane %v1172_v60, 5  ;;  %v1289_v49 = vrot.slane %v3587_v20, 5 }
  0xa2   : > { %v3619_v61 = vsel %vm1880_vm6, %v229_v43, %v2639_v46  ;;  %v3622_v5 = vsel %vm1880_vm6, %v228_v34, %v2638_v33  ;;  %2806 = vrot.lane.b32.xlu1 %v2805_v9, %s3072_s27  ;;  %v3635_v34 = vld [vmem:[%s3174_s10 + $0x64] sm:$0xf]  ;;  %v1292_v43 = vrot.slane %v3596_v28, 5  ;;  %v760_v50 = vshll.u32 %v3415_v19, 16  ;;  %v2925_v19 = vld [vmem:[%s3174_s10 + $0x28] sm:$0xf] }
  0xa3   : > { %v1178_v17 = vshll.u32 %v3635_v34, 16  ;;  %v1182_v45 = vshrl.u32 %v3635_v34, 16  ;;  %v1175_v44 = vor.u32 %v1174_v37, %v1171_v40  ;;  %v2815_v51 = vpack.i.bf16 %v1003_v48, %v1002_v21 }
  0xa4   : > { %v1190_v9 = vrot.slane %v1188_v10, 5  ;;  %v1290_v59 = vsel %vm3176_vm2, %v2473_v30, %v1289_v49  ;;  %v1291_v54 = vrot.slane %v1289_v49, 4  ;;  %v1012_v1 = vunpack.c.l.bf16 %v3628_v11  ;;  %v3671_v63 = vpop.permute.xlu0 %2611  ;;  %v2470_v30 = vld [vmem:[%s3174_s10 + $0x60] sm:$0xe] }
  0xa5   : > { %2826 = vrot.lane.b32.xlu2 %v2825_v3, %s3075_s4  ;;  %v1180_v32 = vrot.slane %v1178_v17, 5  ;;  %v1184_v42 = vrot.slane %v1182_v45, 4  ;;  %v1176_v58 = vrot.slane %v1175_v44, 4  ;;  %v1354_v26 = vunpack.c.l.bf16 %v1290_v59 }
  0xa6   : > { %v1013_v28 = vunpack.c.l.bf16 %v3635_v34  ;;  %v225_v24 = vunpack.c.l.bf16 %v2925_v19  ;;  %v1293_v33 = vsel %vm3176_vm2, %v1291_v54, %v1292_v43  ;;  %v224_v16 = vunpack.c.l.bf16 %v2926_v2 }
  0xa7   : > { %2801 = vrot.lane.b32.xlu0 %v2800_v8, %s3073_s28  ;;  %v1185_v52 = vor.u32 %v1184_v42, %v1180_v32  ;;  %v1181_v46 = vsel %vm3201_vm5, %v1176_v58, %v1180_v32  ;;  %v2433_v56 = vrot.slane %v2425_v53, 9  ;;  %v1355_v8 = vunpack.c.l.bf16 %v1293_v33  ;;  %v2427_v33 = vld [vmem:[%s3174_s10 + $0x48] sm:$0xe] }
  0xa8   : > { %v1244_v7 = vunpack.c.l.bf16 %v1181_v46  ;;  %v3684_v11 = vrot.slane %v757_v15, 4  ;;  %v223_v12 = vunpack.c.l.bf16 %v2927_v38  ;;  %v915_v35 = vrot.slane %v3386_v47, 5 }
  0xa9   : > { %v1186_v20 = vrot.slane %v1185_v52, 4  ;;  %v2835_v29 = vpack.i.bf16 %v1355_v8, %v1354_v26  ;;  %v918_v21 = vrot.slane %v2417_v62, 5  ;;  %v715_v45 = vor.u32 %v3643_v22, %v3639_v18 }
  0xaa   : > { %2821 = vrot.lane.b32.xlu1 %v2820_v23, %s3072_s27  ;;  %v3687_v23 = vpop.permute.xlu2 %2661  ;;  %v718_v40 = vshll.u32 %v3386_v47, 16  ;;  %v2624_v37 = vunpack.i.h.bf16 %v3632_v55  ;;  %v2830_v32 = vpack.i.bf16 %v1013_v28, %v1012_v1  ;;  %v916_v42 = vsel %vm3176_vm2, %v2433_v56, %v915_v35  ;;  %v3713_v1 = vld [vmem:[%s3174_s10 + $0x4] sm:$0xf] }
  0xab   : > { %v1191_v6 = vsel %vm3201_vm5, %v1186_v20, %v1190_v9  ;;  %v917_v10 = vrot.slane %v915_v35, 4  ;;  %v970_v15 = vunpack.c.l.bf16 %v916_v42  ;;  %v716_v44 = vrot.slane %v715_v45, 4  ;;  %v2928_v9 = vld [vmem:[%s3174_s10 + $0x18] sm:$0xf]  ;;  %v3742_v35 = vld [vmem:[%s3174_s10] sm:$0xf] }
  0xac   : > { %v1245_v13 = vunpack.c.l.bf16 %v1191_v6  ;;  %v720_v49 = vrot.slane %v718_v40, 5  ;;  %v722_v18 = vshrl.u32 %v3386_v47, 16  ;;  %v3706_v22 = vrot.slane %v760_v50, 5 }
  0xad   : > { %v2623_v43 = vunpack.i.l.bf16 %v3632_v55  ;;  %v728_v52 = vshll.u32 %v2417_v62, 16  ;;  %v222_v53 = vunpack.c.l.bf16 %v2928_v9  ;;  %v2478_v54 = vrot.slane %v2470_v30, 9 }
  0xae   : > { %v2627_v39 = vpop.permute.xlu1 %2626  ;;  %v2840_v48 = vpack.i.bf16 %v1245_v13, %v1244_v7  ;;  %v724_v59 = vrot.slane %v722_v18, 4  ;;  %v219_v20 = vunpack.c.l.bf16 %v3713_v1  ;;  %v721_v55 = vsel %vm3201_vm5, %v716_v44, %v720_v49  ;;  %v2930_v7 = vld [vmem:[%s3174_s10 + $0x54] sm:$0xf]  ;;  %v3753_v44 = vld [vmem:[%s3174_s10 + $0x40] sm:$0xf] }
  0xaf   : > { %2816 = vrot.lane.b32.xlu0 %v2815_v51, %s3071_s24  ;;  %v2629_v41 = vunpack.i.h.bf16 %v2627_v39  ;;  %v2628_v3 = vunpack.i.l.bf16 %v2627_v39  ;;  %v919_v51 = vsel %vm3176_vm2, %v917_v10, %v918_v21  ;;  %v1324_v50 = vrot.slane %v3635_v34, 5  ;;  %v3732_v34 = vld [vmem:[%s3174_s10 + $0x50] sm:$0x1] }
  0xb0   : > { %2841 = vrot.lane.b32.xlu2 %v2840_v48, %s3075_s4  ;;  %v971_v58 = vunpack.c.l.bf16 %v919_v51  ;;  %v1327_v26 = vrot.slane %v3646_v25, 5  ;;  %v3724_v28 = vsel %vm1880_vm6, %v223_v12, %v2624_v37  ;;  %v730_v46 = vrot.slane %v728_v52, 5  ;;  %v2931_v12 = vld [vmem:[%s3174_s10 + $0x58] sm:$0xf] }
  0xb1   : > { %v3690_v60 = vsel %vm1880_vm6, %v225_v24, %v2629_v41  ;;  %v3694_v17 = vsel %vm1880_vm6, %v224_v16, %v2628_v3  ;;  %v725_v24 = vor.u32 %v724_v59, %v720_v49  ;;  %v2614_v2 = vunpack.i.h.bf16 %v3671_v63  ;;  %v2933_v49 = vld [vmem:[%s3174_s10 + $0x10] sm:$0xf] }
  0xb2   : > { %2836 = vrot.lane.b32.xlu1 %v2835_v29, %s3074_s29  ;;  %v3717_v47 = vpop.permute.xlu0 %2616  ;;  %v2855_v19 = vpack.i.bf16 %v971_v58, %v970_v15  ;;  %v2613_v16 = vunpack.i.l.bf16 %v3671_v63  ;;  %v1325_v39 = vsel %vm3176_vm2, %v2478_v54, %v1324_v50  ;;  %v1326_v62 = vrot.slane %v1324_v50, 4  ;;  %v3735_v41 = vpop.permute.xlu2 %2676  ;;  %v2446_v15 = vld [vmem:[%s3174_s10 + $0x3c] sm:$0xf] }
  0xb3   : > { %v726_v25 = vrot.slane %v725_v24, 4  ;;  %v850_v56 = vunpack.c.l.bf16 %v721_v55  ;;  %v1364_v6 = vunpack.c.l.bf16 %v1325_v39  ;;  %v232_v8 = vunpack.c.l.bf16 %v2930_v7 }
  0xb4   : > { %v1328_v38 = vsel %vm3176_vm2, %v1326_v62, %v1327_v26  ;;  %v233_v13 = vunpack.c.l.bf16 %v2931_v12  ;;  %v2435_v3 = vrot.slane %v2427_v33, 9  ;;  %v929_v29 = vrot.slane %v3436_v14, 5 }
  0xb5   : > { %v218_v21 = vunpack.c.l.bf16 %v3742_v35  ;;  %v731_v48 = vsel %vm3201_vm5, %v726_v25, %v730_v46  ;;  %v1365_v45 = vunpack.c.l.bf16 %v1328_v38  ;;  %v932_v37 = vrot.slane %v3732_v34, 5  ;;  %v2934_v46 = vld [vmem:[%s3174_s10 + $0xc] sm:$0xf] }
  0xb6   : > { %v930_v30 = vsel %vm3176_vm2, %v2435_v3, %v929_v29  ;;  %v221_v18 = vunpack.c.l.bf16 %v2933_v49  ;;  %v2619_v51 = vunpack.i.h.bf16 %v3717_v47  ;;  %v931_v9 = vrot.slane %v929_v29, 4  ;;  %v3781_v3 = vld [vmem:[%s3174_s10 + $0x44] sm:$0x1]  ;;  %v3792_v49 = vld [vmem:[%s3174_s10 + $0x58] sm:$0xf] }
  0xb7   : > { %2831 = vrot.lane.b32.xlu0 %v2830_v32, %s3071_s24  ;;  %v851_v32 = vunpack.c.l.bf16 %v731_v48  ;;  %v2845_v52 = vpack.i.bf16 %v1365_v45, %v1364_v6  ;;  %v974_v55 = vunpack.c.l.bf16 %v930_v30  ;;  %v1885_v50 = vsel %vm1880_vm6, %v222_v53, %v2623_v43 }
  0xb8   : > { %2856 = vrot.lane.b32.xlu2 %v2855_v19, %s3072_s27  ;;  %v933_v26 = vsel %vm3176_vm2, %v931_v9, %v932_v37  ;;  %v1006_v19 = vunpack.c.l.bf16 %v2446_v15  ;;  %v1007_v24 = vunpack.c.l.bf16 %v3753_v44  ;;  %v220_v33 = vunpack.c.l.bf16 %v2934_v46 }
  0xb9   : > { %v2850_v58 = vpack.i.bf16 %v851_v32, %v850_v56  ;;  %v2618_v39 = vunpack.i.l.bf16 %v3717_v47  ;;  %v975_v25 = vunpack.c.l.bf16 %v933_v26  ;;  %v763_v43 = vor.u32 %v3706_v22, %v3684_v11 }
  0xba   : > { %v1884_v53 = vsel %vm1880_vm6, %v221_v18, %v2619_v51  ;;  %v1097_v56 = vshrl.u32 %v2446_v15, 16  ;;  %v766_v6 = vshll.u32 %v3436_v14, 16  ;;  %v770_v7 = vshrl.u32 %v3436_v14, 16  ;;  %v3783_v45 = vpop.permute.xlu2 %2691 }
  0xbb   : > { %2851 = vrot.lane.b32.xlu1 %v2850_v58, %s3073_s28  ;;  %v2870_v38 = vpack.i.bf16 %v975_v25, %v974_v55  ;;  %v1100_v12 = vshll.u32 %v2446_v15, 16  ;;  %v776_v47 = vshll.u32 %v3732_v34, 16  ;;  %v2865_v29 = vpack.i.bf16 %v1007_v24, %v1006_v19  ;;  %v2450_v15 = vld [vmem:[%s3174_s10 + $0x54] sm:$0xf] }
  0xbc   : > { %v2652_v40 = vpop.permute.xlu1 %2651  ;;  %v768_v48 = vrot.slane %v766_v6, 5  ;;  %v772_v11 = vrot.slane %v770_v7, 4  ;;  %v1306_v30 = vrot.slane %v3781_v3, 5  ;;  %v1099_v18 = vrot.slane %v1097_v56, 4 }
  0xbd   : > { %v2654_v42 = vunpack.i.h.bf16 %v2652_v40  ;;  %v2653_v10 = vunpack.i.l.bf16 %v2652_v40  ;;  %v778_v14 = vrot.slane %v776_v47, 5  ;;  %v1102_v51 = vrot.slane %v1100_v12, 5 }
  0xbe   : > { %v1010_v25 = vunpack.c.l.bf16 %v2450_v15  ;;  %v1145_v56 = vshrl.u32 %v2450_v15, 16  ;;  %v1154_v63 = vshll.u32 %v3792_v49, 16 }
  0xbf   : > { %v3758_v59 = vsel %vm1880_vm6, %v233_v13, %v2654_v42  ;;  %v3761_v54 = vsel %vm1880_vm6, %v232_v8, %v2653_v10  ;;  %2846 = vrot.lane.b32.xlu0 %v2845_v52, %s3074_s29  ;;  %v2467_v8 = vld [vmem:[%s3174_s10 + $0x3c] sm:$0xe]  ;;  %v764_v13 = vrot.slane %v763_v43, 4  ;;  %v773_v42 = vor.u32 %v772_v11, %v768_v48 }
  0xc0   : > { %2871 = vrot.lane.b32.xlu2 %v2870_v38, %s3072_s27  ;;  %v2475_v32 = vrot.slane %v2467_v8, 9  ;;  %v1303_v10 = vrot.slane %v3753_v44, 5  ;;  %v1011_v43 = vunpack.c.l.bf16 %v3792_v49  ;;  %v1883_v8 = vsel %vm1880_vm6, %v220_v33, %v2618_v39 }
  0xc1   : > { %v3771_v62 = vpop.permute.xlu0 %2641  ;;  %v769_v34 = vsel %vm3201_vm5, %v764_v13, %v768_v48  ;;  %v774_v58 = vrot.slane %v773_v42, 4  ;;  %v1147_v13 = vrot.slane %v1145_v56, 4  ;;  %v1148_v48 = vshll.u32 %v2450_v15, 16 }
  0xc2   : > { %v854_v55 = vunpack.c.l.bf16 %v769_v34  ;;  %v1304_v26 = vsel %vm3176_vm2, %v2475_v32, %v1303_v10  ;;  %v1305_v19 = vrot.slane %v1303_v10, 4  ;;  %v1103_v11 = vor.u32 %v1102_v51, %v1099_v18  ;;  %v3819_v10 = vpop.permute.xlu2 %2706  ;;  %v3826_v18 = vld [vmem:[%s3174_s10 + $0x64] sm:$0xf] }
  0xc3   : > { %2866 = vrot.lane.b32.xlu1 %v2865_v29, %s3071_s24  ;;  %v1358_v46 = vunpack.c.l.bf16 %v1304_v26  ;;  %v1106_v32 = vshll.u32 %v3753_v44, 16  ;;  %v1110_v39 = vshrl.u32 %v3753_v44, 16  ;;  %v1116_v34 = vshll.u32 %v3781_v3, 16 }
  0xc4   : > { %v2657_v22 = vpop.permute.xlu1 %2656  ;;  %v1307_v7 = vsel %vm3176_vm2, %v1305_v19, %v1306_v30  ;;  %v1104_v33 = vrot.slane %v1103_v11, 4  ;;  %v811_v15 = vor.u32 %v3658_v36, %v3656_v57  ;;  %v814_v51 = vshll.u32 %v3826_v18, 16 }
  0xc5   : > { %v2659_v40 = vunpack.i.h.bf16 %v2657_v22  ;;  %v2658_v37 = vunpack.i.l.bf16 %v2657_v22  ;;  %v1359_v12 = vunpack.c.l.bf16 %v1307_v7  ;;  %v1112_v44 = vrot.slane %v1110_v39, 4 }
  0xc6   : > { %v818_v26 = vshrl.u32 %v3826_v18, 16  ;;  %v2608_v56 = vunpack.i.l.bf16 %v3541_v4  ;;  %v1881_v7 = vsel %vm1880_vm6, %v218_v21, %v2613_v16  ;;  %v1317_v39 = vrot.slane %v3792_v49, 5 }
  0xc7   : > { %v3795_v52 = vsel %vm1897_vm7, %v1885_v50, %v2658_v37  ;;  %v3799_v9 = vsel %vm1897_vm7, %v3724_v28, %v2659_v40  ;;  %v779_v50 = vsel %vm3201_vm5, %v774_v58, %v778_v14  ;;  %v2885_v40 = vpack.i.bf16 %v1359_v12, %v1358_v46  ;;  %v2469_v12 = vld [vmem:[%s3174_s10 + $0x54] sm:$0xe] }
  0xc8   : > { %v855_v38 = vunpack.c.l.bf16 %v779_v50  ;;  %v2880_v37 = vpack.i.bf16 %v1011_v43, %v1010_v25  ;;  %v1150_v58 = vrot.slane %v1148_v48, 5  ;;  %v816_v46 = vrot.slane %v814_v51, 5 }
  0xc9   : > { %v2647_v24 = vpop.permute.xlu0 %2646  ;;  %2886 = vrot.lane.b32.xlu2 %v2885_v40, %s3074_s29  ;;  %v1118_v25 = vrot.slane %v1116_v34, 5  ;;  %v2609_v43 = vunpack.i.h.bf16 %v3541_v4  ;;  %v820_v50 = vrot.slane %v818_v26, 4  ;;  %v2477_v40 = vrot.slane %v2469_v12, 9 }
  0xca   : > { %v2649_v6 = vunpack.i.h.bf16 %v2647_v24  ;;  %v2648_v28 = vunpack.i.l.bf16 %v2647_v24  ;;  %v2860_v14 = vpack.i.bf16 %v855_v38, %v854_v55  ;;  %v3834_v55 = vld [vmem:[%s3174_s10 + $0x68] sm:$0x1]  ;;  %v812_v24 = vrot.slane %v811_v15, 4  ;;  %v3870_v34 = vpop.permute.xlu2 %2721 }
  0xcb   : > { %2881 = vrot.lane.b32.xlu1 %v2880_v37, %s3071_s24  ;;  %v821_v11 = vor.u32 %v820_v50, %v816_v46  ;;  %v1318_v26 = vsel %vm3176_vm2, %v2477_v40, %v1317_v39  ;;  %v3881_v50 = vsel %vm1897_vm7, %v1881_v7, %v2608_v56  ;;  %v943_v40 = vrot.slane %v3826_v18, 5 }
  0xcc   : > { %v3811_v47 = vsel %vm1897_vm7, %v1883_v8, %v2648_v28  ;;  %v3814_v29 = vsel %vm1897_vm7, %v1884_v53, %v2649_v6  ;;  %v2672_v22 = vpop.permute.xlu1 %2671  ;;  %2861 = vrot.lane.b32.xlu0 %v2860_v14, %s3073_s28  ;;  %v1108_v53 = vrot.slane %v1106_v32, 5  ;;  %v824_v6 = vshll.u32 %v3834_v55, 16  ;;  %v2461_v28 = vld [vmem:[%s3174_s10 + $0x5c] sm:$0x1] }
  0xcd   : > { %v2674_v42 = vunpack.i.h.bf16 %v2672_v22  ;;  %v2673_v30 = vunpack.i.l.bf16 %v2672_v22  ;;  %v817_v48 = vsel %vm3201_vm5, %v812_v24, %v816_v46  ;;  %v1151_v14 = vor.u32 %v1150_v58, %v1147_v13 }
  0xce   : > { %v1109_v57 = vsel %vm3201_vm5, %v1104_v33, %v1108_v53  ;;  %v826_v22 = vrot.slane %v824_v6, 5  ;;  %v822_v35 = vrot.slane %v821_v11, 4  ;;  %v858_v37 = vunpack.c.l.bf16 %v817_v48  ;;  %v2429_v48 = vld [vmem:[%s3174_s10 + $0x60] sm:$0xe] }
  0xcf   : > { %v3831_v3 = vsel %vm1897_vm7, %v3619_v61, %v2674_v42  ;;  %v3842_v36 = vsel %vm1897_vm7, %v3622_v5, %v2673_v30  ;;  %v1113_v61 = vor.u32 %v1112_v44, %v1108_v53  ;;  %v1882_v5 = vsel %vm1880_vm6, %v219_v20, %v2614_v2 }
  0xd0   : > { %v1238_v38 = vunpack.c.l.bf16 %v1109_v57  ;;  %v1158_v20 = vshrl.u32 %v3792_v49, 16  ;;  %v1164_v2 = vshll.u32 %v2461_v28, 16  ;;  %v1152_v21 = vrot.slane %v1151_v14, 4  ;;  %v2936_v14 = vld [vmem:[%s3174_s10 + $0x48] sm:$0xf] }
  0xd1   : > { %v3844_v19 = vpop.permute.xlu0 %2666  ;;  %v1114_v8 = vrot.slane %v1113_v61, 4  ;;  %v1156_v32 = vrot.slane %v1154_v63, 5  ;;  %v827_v42 = vsel %vm3201_vm5, %v822_v35, %v826_v22  ;;  %v1320_v30 = vrot.slane %v2461_v28, 5 }
  0xd2   : > { %v1160_v33 = vrot.slane %v1158_v20, 4  ;;  %v1166_v53 = vrot.slane %v1164_v2, 5  ;;  %v859_v51 = vunpack.c.l.bf16 %v827_v42  ;;  %v2664_v49 = vunpack.i.h.bf16 %v3687_v23  ;;  %v3905_v20 = vld [vmem:[%s3174_s10 + $0x70] sm:$0xf]  ;;  %v2937_v2 = vld [vmem:[%s3174_s10 + $0x4c] sm:$0xf] }
  0xd3   : > { %v1119_v1 = vsel %vm3201_vm5, %v1114_v8, %v1118_v25  ;;  %v1157_v58 = vsel %vm3201_vm5, %v1152_v21, %v1156_v32  ;;  %v1319_v24 = vrot.slane %v1317_v39, 4  ;;  %v1362_v25 = vunpack.c.l.bf16 %v1318_v26  ;;  %v2471_v26 = vld [vmem:[%s3174_s10 + $0x6c] sm:$0xe] }
  0xd4   : > { %v3861_v4 = vpop.permute.xlu1 %2686  ;;  %v1239_v16 = vunpack.c.l.bf16 %v1119_v1  ;;  %v1161_v44 = vor.u32 %v1160_v33, %v1156_v32  ;;  %v1242_v57 = vunpack.c.l.bf16 %v1157_v58  ;;  %v2900_v46 = vpack.i.bf16 %v859_v51, %v858_v37 }
  0xd5   : > { %v1321_v28 = vsel %vm3176_vm2, %v1319_v24, %v1320_v30  ;;  %v3886_v8 = vsel %vm1897_vm7, %v1882_v5, %v2609_v43  ;;  %v2663_v11 = vunpack.i.l.bf16 %v3687_v23  ;;  %v2679_v22 = vunpack.i.h.bf16 %v3735_v41  ;;  %v2454_v23 = vld [vmem:[%s3174_s10 + $0x6c] sm:$0xf]  ;;  %v3919_v30 = vpop.permute.xlu2 %2736 }
  0xd6   : > { %v2875_v13 = vpack.i.bf16 %v1239_v16, %v1238_v38  ;;  %v1162_v61 = vrot.slane %v1161_v44, 4  ;;  %2901 = vrot.lane.b32.xlu2 %v2900_v46, %s3073_s28  ;;  %v1363_v7 = vunpack.c.l.bf16 %v1321_v28  ;;  %v230_v1 = vunpack.c.l.bf16 %v2936_v14  ;;  %s2500_s28 = sshll.u32 %s3054_s16, 5 }
  0xd7   : > { %v231_v16 = vunpack.c.l.bf16 %v2937_v2  ;;  %v2437_v21 = vrot.slane %v2429_v48, 9  ;;  %v2644_v37 = vunpack.i.h.bf16 %v3771_v62  ;;  %v2643_v32 = vunpack.i.l.bf16 %v3771_v62 }
  0xd8   : > { %2876 = vrot.lane.b32.xlu0 %v2875_v13, %s3075_s4  ;;  %v1167_v56 = vsel %vm3201_vm5, %v1162_v61, %v1166_v53  ;;  %v2895_v35 = vpack.i.bf16 %v1363_v7, %v1362_v25  ;;  %v945_v13 = vrot.slane %v943_v40, 4  ;;  %v1014_v42 = vunpack.c.l.bf16 %v2454_v23  ;;  %v3934_v25 = vld [vmem:[%s3174_s10 + $0x74] sm:$0x1] }
  0xd9   : > { %v2682_v15 = vpop.permute.xlu0 %2681  ;;  %v1243_v63 = vunpack.c.l.bf16 %v1167_v56  ;;  %v1015_v53 = vunpack.c.l.bf16 %v3905_v20  ;;  %v2678_v18 = vunpack.i.l.bf16 %v3735_v41  ;;  %v1193_v58 = vshrl.u32 %v2454_v23, 16 }
  0xda   : > { %v2684_v38 = vunpack.i.h.bf16 %v2682_v15  ;;  %v2683_v12 = vunpack.i.l.bf16 %v2682_v15  ;;  %2896 = vrot.lane.b32.xlu1 %v2895_v35, %s3074_s29  ;;  %v1904_v44 = vsel %vm1897_vm7, %v3694_v17, %v2663_v11  ;;  %v1894_v41 = vsel %vm1880_vm6, %v231_v16, %v2644_v37  ;;  %v2045_v37 = vld [vmem:[%s4238_s1 + $0x10] sm:$0xf] }
  0xdb   : > { %v2890_v33 = vpack.i.bf16 %v1243_v63, %v1242_v57  ;;  %v1905_v46 = vsel %vm1897_vm7, %v3690_v60, %v2664_v49  ;;  %v1196_v28 = vshll.u32 %v2454_v23, 16  ;;  %v2479_v48 = vrot.slane %v2471_v26, 9 }
  0xdc   : > { %v2702_v6 = vpop.permute.xlu1 %2701  ;;  %v3897_v43 = vsel %vm1897_vm7, %v3758_v59, %v2684_v38  ;;  %v3901_v5 = vsel %vm1897_vm7, %v3761_v54, %v2683_v12  ;;  %v946_v59 = vrot.slane %v3834_v55, 5  ;;  %v944_v54 = vsel %vm3176_vm2, %v2437_v21, %v943_v40 }
  0xdd   : > { %v978_v62 = vunpack.c.l.bf16 %v944_v54  ;;  %v2704_v55 = vunpack.i.h.bf16 %v2702_v6  ;;  %v2703_v15 = vunpack.i.l.bf16 %v2702_v6  ;;  %v1893_v6 = vsel %vm1880_vm6, %v230_v1, %v2643_v32 }
  0xde   : > { %v947_v51 = vsel %vm3176_vm2, %v945_v13, %v946_v59  ;;  %v2910_v38 = vpack.i.bf16 %v1015_v53, %v1014_v42  ;;  %v1331_v11 = vrot.slane %v3905_v20, 5  ;;  %v1195_v56 = vrot.slane %v1193_v58, 4  ;;  %v3963_v42 = vpop.permute.xlu2 %2751 }
  0xdf   : > { %v979_v24 = vunpack.c.l.bf16 %v947_v51  ;;  %v3931_v61 = vsel %vm1914_vm8, %v1904_v44, %v2703_v15  ;;  %v3938_v12 = vsel %vm1914_vm8, %v1905_v46, %v2704_v55  ;;  %v1334_v7 = vrot.slane %v3934_v25, 5 }
  0xe0   : > { %2891 = vrot.lane.b32.xlu0 %v2890_v33, %s3075_s4  ;;  %v1332_v14 = vsel %vm3176_vm2, %v2479_v48, %v1331_v11  ;;  %v1333_v63 = vrot.slane %v1331_v11, 4  ;;  %v1910_v1 = vsel %vm1897_vm7, %v1893_v6, %v2678_v18  ;;  %v1911_v23 = vsel %vm1897_vm7, %v1894_v41, %v2679_v22 }
  0xe1   : > { %v3912_v39 = vpop.permute.xlu0 %2696  ;;  %v2905_v17 = vpack.i.bf16 %v979_v24, %v978_v62  ;;  %v1198_v16 = vrot.slane %v1196_v28, 5  ;;  %v1366_v32 = vunpack.c.l.bf16 %v1332_v14  ;;  %v2055_v18 = vunpack.c.l.b16 %v2045_v37 }
  0xe2   : > { %2911 = vrot.lane.b32.xlu1 %v2910_v38, %s3071_s24  ;;  %v1335_v22 = vsel %vm3176_vm2, %v1333_v63, %v1334_v7  ;;  %v2689_v62 = vunpack.i.h.bf16 %v3861_v4  ;;  %v1202_v55 = vshll.u32 %v3905_v20, 16  ;;  %v2688_v15 = vunpack.i.l.bf16 %v3861_v4 }
  0xe3   : > { %v1367_v59 = vunpack.c.l.bf16 %v1335_v22  ;;  %v1199_v0 = vor.u32 %v1198_v16, %v1195_v56  ;;  %v2058_v58 = vpack.c.b16 %v2055_v18, %v2055_v18  ;;  %v2693_v41 = vunpack.i.l.bf16 %v3783_v45 }
  0xe4   : > { %v2717_v57 = vpop.permute.xlu1 %2716  ;;  %v1204_v26 = vrot.slane %v1202_v55, 5  ;;  %v2724_v28 = vunpack.i.h.bf16 %v3870_v34  ;;  %v2723_v38 = vunpack.i.l.bf16 %v3870_v34  ;;  %v2738_v14 = vunpack.i.l.bf16 %v3919_v30 }
  0xe5   : > { %v2719_v60 = vunpack.i.h.bf16 %v2717_v57  ;;  %v2718_v49 = vunpack.i.l.bf16 %v2717_v57  ;;  %v2920_v51 = vpack.i.bf16 %v1367_v59, %v1366_v32  ;;  %v1200_v44 = vrot.slane %v1199_v0, 4 }
  0xe6   : > { %v1212_v57 = vshll.u32 %v3934_v25, 16  ;;  %v2088_v46 = vsel %vm2086_vm9, %v2058_v58, 0  ;;  %v1915_v25 = vsel %vm1914_vm8, %v3881_v50, %v2688_v15  ;;  %v3999_v16 = vsel %vm1914_vm8, %v3811_v47, %v2693_v41  ;;  %v2939_v41 = vld [vmem:[%s3174_s10 + $0x34] sm:$0xf] }
  0xe7   : > { %v3948_v35 = vsel %vm1914_vm8, %v1910_v1, %v2718_v49  ;;  %v3951_v21 = vsel %vm1914_vm8, %v1911_v23, %v2719_v60  ;;  %2095 = vmatpush.bf16.msra.mxu0 %v2088_v46  ;;  %2510 = vmatpush.bf16.msra.mxu1 %v2088_v46  ;;  %v1205_v7 = vsel %vm3201_vm5, %v1200_v44, %v1204_v26  ;;  %v2507_v1 = vld [vmem:[%s4238_s1] sm:$0xff]  ;;  %v3995_v23 = vpop.permute.xlu2 %2766 }
  0xe8   : > { %2906 = vrot.lane.b32.xlu0 %v2905_v17, %s3072_s27  ;;  %2511 = vmatpush.bf16.msra.mxu2 %v2088_v46  ;;  %v1214_v60 = vrot.slane %v1212_v57, 5  ;;  %v2938_v57 = vld [vmem:[%s3174_s10 + $0x30] sm:$0xf]  ;;  %s4153_s10 = sand.u32 1, %s3042_s13   ;;  %s2509_s27 = sshll.u32 %s3050_s15, 4 }
  0xe9   : > { %v2712_v2 = vpop.permute.xlu0 %2711  ;;  %2512 = vmatpush.bf16.msra.mxu3 %v2088_v46  ;;  %v2634_v46 = vunpack.i.h.bf16 %v3575_v27  ;;  %s2382_s21 = sshll.u32 %s4153_s10, 7 }
  0xea   : > { %v2714_v40 = vunpack.i.h.bf16 %v2712_v2  ;;  %v2713_v33 = vunpack.i.l.bf16 %v2712_v2  ;;  %v1246_v2 = vunpack.c.l.bf16 %v1205_v7  ;;  %s4156_s24 = scalar_lea.vmem [#allocation2], %s2382_s21  ;;  %s2217_s21 = scalar_lea.sflag [#allocation3], %s4153_s10 }
  0xeb   : > { %s2237_s8 = sshll.u32 %s4156_s24, 4  ;;  %s2238_s8 = int_to_ptr.vmem [resolvable:$true] %s2237_s8 }
  0xec   : > { %v3961_v54 = vsel %vm1914_vm8, %v3831_v3, %v2714_v40  ;;  %v2732_v13 = vpop.permute.xlu1 %2731  ;;  %v3967_v53 = vsel %vm1914_vm8, %v3842_v36, %v2713_v33  ;;  %v1206_v3 = vshrl.u32 %v3905_v20, 16  ;;  %v2694_v36 = vunpack.i.h.bf16 %v3783_v45  ;;  %v2508_v20 = vld [vmem:[%s4238_s1 + $0x8] sm:$0xff] }
  0xed   : > { %v1916_v45 = vsel %vm1914_vm8, %v3886_v8, %v2689_v62  ;;  %v2734_v34 = vunpack.i.h.bf16 %v2732_v13  ;;  %v2733_v11 = vunpack.i.l.bf16 %v2732_v13  ;;  %v2739_v8 = vunpack.i.h.bf16 %v3919_v30  ;;  %2096 = vmatpush.bf16.msra.mxu0 %v2508_v20  ;;  %2513 = vmatpush.bf16.msra.mxu1 %v2508_v20 }
  0xee   : > { %v1208_v6 = vrot.slane %v1206_v3, 4  ;;  %2514 = vmatpush.bf16.msra.mxu2 %v2508_v20  ;;  %v4003_v40 = vsel %vm1914_vm8, %v3814_v29, %v2694_v36  ;;  %v4007_v30 = vsel %vm1914_vm8, %v3901_v5, %v2723_v38  ;;  %v4015_v33 = vsel %vm1914_vm8, %v3897_v43, %v2724_v28  ;;  %2515 = vmatpush.bf16.msra.mxu3 %v2508_v20 }
  0xef   : > { %v226_v36 = vunpack.c.l.bf16 %v2938_v57  ;;  %v2782_v28 = vpop.permute.xlu2 %2781  ;;  %v2699_v20 = vunpack.i.h.bf16 %v3912_v39 }
  0xf0   : > { %2921 = vrot.lane.b32.xlu0 %v2920_v51, %s3074_s29  ;;  %v1209_v48 = vor.u32 %v1208_v6, %v1204_v26  ;;  %v2633_v6 = vunpack.i.l.bf16 %v3575_v27  ;;  %v2708_v27 = vunpack.i.l.bf16 %v3819_v10  ;;  %s2234_s29 = sadd.s32 %s2509_s27, %s2500_s28 }
  0xf1   : > { %v2727_v24 = vpop.permute.xlu0 %2726  ;;  %2097 = vmatpush.bf16.msra.mxu0 %v2507_v1  ;;  %2516 = vmatpush.bf16.msra.mxu1 %v2507_v1 }
  0xf2   : > { %v2729_v4 = vunpack.i.h.bf16 %v2727_v24  ;;  %v2728_v17 = vunpack.i.l.bf16 %v2727_v24  ;;  %v1210_v63 = vrot.slane %v1209_v48, 4  ;;  %2517 = vmatpush.bf16.msra.mxu2 %v2507_v1  ;;  %2518 = vmatpush.bf16.msra.mxu3 %v2507_v1  ;;  %v227_v24 = vunpack.c.l.bf16 %v2939_v41 }
  0xf4   : > { %v2747_v56 = vpop.permute.xlu1 %2746  ;;  %v1932_v49 = vsel %vm1931_vm10, %v1915_v25, %v2728_v17  ;;  %v1933_v50 = vsel %vm1931_vm10, %v1916_v45, %v2729_v4  ;;  %v1215_v32 = vsel %vm3201_vm5, %v1210_v63, %v1214_v60  ;;  %v2669_v4 = vunpack.i.h.bf16 %v3844_v19 }
  0xf5   : > { %v1949_v37 = vsel %vm1948_vm11, %v1932_v49, %v2733_v11  ;;  %v1950_v22 = vsel %vm1948_vm11, %v1933_v50, %v2734_v34  ;;  %v2749_v47 = vunpack.i.h.bf16 %v2747_v56  ;;  %v2748_v59 = vunpack.i.l.bf16 %v2747_v56 }
  0xf6   : > { %v1247_v29 = vunpack.c.l.bf16 %v1215_v32  ;;  %v1966_v31 = vsel %vm1965_vm12, %v1949_v37, %v2738_v14  ;;  %v1967_v0 = vsel %vm1965_vm12, %v1950_v22, %v2739_v8  ;;  %v2668_v17 = vunpack.i.l.bf16 %v3844_v19 }
  0xf7   : > { %v2698_v25 = vunpack.i.l.bf16 %v3912_v39  ;;  %v1890_v48 = vsel %vm1880_vm6, %v227_v24, %v2634_v46  ;;  %v1889_v34 = vsel %vm1880_vm6, %v226_v36, %v2633_v6  ;;  %v2709_v11 = vunpack.i.h.bf16 %v3819_v10 }
  0xf8   : > { %v2915_v62 = vpack.i.bf16 %v1247_v29, %v1246_v2  ;;  %v1907_v56 = vsel %vm1897_vm7, %v1890_v48, %v2669_v4  ;;  %v1906_v7 = vsel %vm1897_vm7, %v1889_v34, %v2668_v17  ;;  %v2754_v19 = vunpack.i.h.bf16 %v3963_v42  ;;  %v2797_v29 = vpop.permute.xlu2 %2796 }
  0xf9   : > { %v2742_v13 = vpop.permute.xlu0 %2741  ;;  %v2753_v50 = vunpack.i.l.bf16 %v3963_v42  ;;  %v1920_v39 = vsel %vm1914_vm8, %v3799_v9, %v2699_v20  ;;  %v1919_v8 = vsel %vm1914_vm8, %v3795_v52, %v2698_v25  ;;  %v2784_v14 = vunpack.i.h.bf16 %v2782_v28 }
  0xfa   : > { %v2744_v18 = vunpack.i.h.bf16 %v2742_v13  ;;  %v2743_v5 = vunpack.i.l.bf16 %v2742_v13  ;;  %2916 = vrot.lane.b32.xlu2 %v2915_v62, %s3075_s4  ;;  %v2783_v63 = vunpack.i.l.bf16 %v2782_v28  ;;  %v1923_v10 = vsel %vm1914_vm8, %v1906_v7, %v2708_v27  ;;  %s2501_s4 = sshll.u32 %s2234_s29, 3 }
  0xfb   : > { %v1924_v1 = vsel %vm1914_vm8, %v1907_v56, %v2709_v11  ;;  %v2768_v42 = vunpack.i.l.bf16 %v3995_v23  ;;  %v2799_v13 = vunpack.i.h.bf16 %v2797_v29  ;;  %s2236_s7 = scalar_lea.hbm %s4239_s2, %s2501_s4 }
  0xfc   : > { %v1983_v43 = vsel %vm1982_vm13, %v1966_v31, %v2743_v5  ;;  %v1984_v55 = vsel %vm1982_vm13, %v1967_v0, %v2744_v18  ;;  %v2762_v15 = vpop.permute.xlu1 %2761  ;;  %v2798_v18 = vunpack.i.l.bf16 %v2797_v29  ;;  %v1936_v0 = vsel %vm1931_vm10, %v1919_v8, %v2753_v50  ;;  %s2239_s9 = sshll.u32 %s2236_s7, 4  ;;  %s2240_s9 = int_to_ptr.hbm [resolvable:$true] %s2239_s9 }
  0xfd   : > { %v2000_v51 = vsel %vm1999_vm14, %v1983_v43, %v2748_v59  ;;  %v2001_v58 = vsel %vm1999_vm14, %v1984_v55, %v2749_v47  ;;  %v2764_v60 = vunpack.i.h.bf16 %v2762_v15  ;;  %v2763_v49 = vunpack.i.l.bf16 %v2762_v15  ;;  %s2954_s27 = sshra.s32 %s2240_s9, 4  ;;  %s2955_s27 = int_to_ptr.hbm [resolvable:$true] %s2954_s27 }
  0xfe   : > { %v2017_v3 = vsel %vm2016_vm15, %v2000_v51, 0.0  ;;  %v2018_v44 = vsel %vm2016_vm15, %v2001_v58, 0.0  ;;  %v2769_v59 = vunpack.i.h.bf16 %v3995_v23  ;;  %v1937_v43 = vsel %vm1931_vm10, %v1920_v39, %v2754_v19  ;;  %s2956_s28 = scalar_lea.hbm %s2955_s27, 128  ;;  %p2961_p2 = scmp.lt.s32.totalorder %s2955_s27, %s4239_s2 }
  0xff   : > { %v2033_v26 = vpack.c.bf16 %v2018_v44, %v2017_v3  ;;  %v1940_v9 = vsel %vm1931_vm10, %v1923_v10, %v2763_v49  ;;  %v1941_v52 = vsel %vm1931_vm10, %v1924_v1, %v2764_v60  ;;  %p2957_p13 = scmp.ne.s32.totalorder %s2955_s27, %s2956_s28  ;;  %p2962_p4 = scmp.lt.s32.totalorder %s2960_s5, %s2956_s28 }
 0x100   : > { %v2812_v49 = vpop.permute.xlu2 %2811 }
 0x101   : > { %v2757_v38 = vpop.permute.xlu0 %2756  ;;  %2488 = vmatmul.msk.bf16.vlgmr.msra.gmra.mxu0 %vm2061_vm0, %v2033_v26  ;;  %p2958_p0 = pnand %p2957_p13, %p3148_p3  ;;  %p2963_p5 = por %p2962_p4, %p2961_p2 }
 0x102   : > { %v2759_v37 = vunpack.i.h.bf16 %v2757_v38  ;;  %v2758_v22 = vunpack.i.l.bf16 %v2757_v38 }
 0x103   : > { %p2959_p1 = pneg %p2958_p0 }
 0x104   : > { %v2777_v45 = vpop.permute.xlu1 %2776  ;;  %v1953_v23 = vsel %vm1948_vm11, %v1936_v0, %v2758_v22  ;;  %v1954_v51 = vsel %vm1948_vm11, %v1937_v43, %v2759_v37 }
 0x105   : > { %v2779_v44 = vunpack.i.h.bf16 %v2777_v45  ;;  %v2778_v26 = vunpack.i.l.bf16 %v2777_v45  ;;  %v1970_v46 = vsel %vm1965_vm12, %v1953_v23, %v2768_v42  ;;  %v1971_v4 = vsel %vm1965_vm12, %v1954_v51, %v2769_v59  ;;  %p2964_p6 = pnand %p2963_p5, %p2959_p1 }
 0x106   : > { %v2813_v23 = vunpack.i.l.bf16 %v2812_v49 }
 0x107   : > { %v1987_v45 = vsel %vm1982_vm13, %v1970_v46, %v2778_v26  ;;  %v1988_v48 = vsel %vm1982_vm13, %v1971_v4, %v2779_v44 }
 0x108   : > { %v2827_v37 = vpop.permute.xlu2 %2826 }
 0x109   : > { %v2772_v2 = vpop.permute.xlu0 %2771  ;;  %v2828_v59 = vunpack.i.l.bf16 %v2827_v37 }
 0x10a   : > { %v2774_v32 = vunpack.i.h.bf16 %v2772_v2  ;;  %v2773_v47 = vunpack.i.l.bf16 %v2772_v2 }
 0x10c   : > { %v1957_v5 = vsel %vm1948_vm11, %v1940_v9, %v2773_v47  ;;  %v1958_v62 = vsel %vm1948_vm11, %v1941_v52, %v2774_v32  ;;  %v2792_v31 = vpop.permute.xlu1 %2791  ;;  %v2829_v47 = vunpack.i.h.bf16 %v2827_v37 }
 0x10d   : > { %v2794_v55 = vunpack.i.h.bf16 %v2792_v31  ;;  %v2793_v15 = vunpack.i.l.bf16 %v2792_v31  ;;  %v1974_v58 = vsel %vm1965_vm12, %v1957_v5, %v2783_v63  ;;  %v1975_v3 = vsel %vm1965_vm12, %v1958_v62, %v2784_v14 }
 0x10f   : > { %v1991_v57 = vsel %vm1982_vm13, %v1974_v58, %v2793_v15  ;;  %v1992_v36 = vsel %vm1982_vm13, %v1975_v3, %v2794_v55  ;;  %v2814_v15 = vunpack.i.h.bf16 %v2812_v49 }
 0x110   : > { %v2008_v41 = vsel %vm1999_vm14, %v1991_v57, %v2798_v18  ;;  %v2009_v24 = vsel %vm1999_vm14, %v1992_v36, %v2799_v13  ;;  %v2842_v57 = vpop.permute.xlu2 %2841  ;;  %v1944_v36 = vsel %vm1931_vm10, %v3948_v35, %v2813_v23 }
 0x111   : > { %v2787_v6 = vpop.permute.xlu0 %2786  ;;  %v2025_v28 = vsel %vm2016_vm15, %v2008_v41, 0.0  ;;  %v2026_v38 = vsel %vm2016_vm15, %v2009_v24, 0.0  ;;  %v1945_v41 = vsel %vm1931_vm10, %v3951_v21, %v2814_v15  ;;  %v2844_v24 = vunpack.i.h.bf16 %v2842_v57 }
 0x112   : > { %v2789_v17 = vunpack.i.h.bf16 %v2787_v6  ;;  %v2788_v20 = vunpack.i.l.bf16 %v2787_v6  ;;  %v2037_v25 = vpack.c.bf16 %v2026_v38, %v2025_v28  ;;  %v2843_v46 = vunpack.i.l.bf16 %v2842_v57 }
 0x114   : > { %v2004_v34 = vsel %vm1999_vm14, %v1987_v45, %v2788_v20  ;;  %v2005_v11 = vsel %vm1999_vm14, %v1988_v48, %v2789_v17  ;;  %v2807_v27 = vpop.permute.xlu1 %2806  ;;  %2492 = vmatmul.msk.bf16.vlgmr.msra.gmra.mxu2 %vm2061_vm0, %v2037_v25 }
 0x115   : > { %v2021_v56 = vsel %vm2016_vm15, %v2004_v34, 0.0  ;;  %v2022_v7 = vsel %vm2016_vm15, %v2005_v11, 0.0  ;;  %v2809_v14 = vunpack.i.h.bf16 %v2807_v27  ;;  %v2808_v63 = vunpack.i.l.bf16 %v2807_v27 }
 0x116   : > { %v2035_v60 = vpack.c.bf16 %v2022_v7, %v2021_v56 }
 0x118   : > { %2490 = vmatmul.msk.bf16.vlgmr.msra.gmra.mxu1 %vm2061_vm0, %v2035_v60  ;;  %v2857_v7 = vpop.permute.xlu2 %2856 }
 0x119   : > { %v2802_v19 = vpop.permute.xlu0 %2801 }
 0x11a   : > { %v2804_v50 = vunpack.i.h.bf16 %v2802_v19  ;;  %v2803_v39 = vunpack.i.l.bf16 %v2802_v19 }
 0x11c   : > { %v2822_v8 = vpop.permute.xlu1 %2821  ;;  %v1934_v10 = vsel %vm1931_vm10, %v3999_v16, %v2803_v39  ;;  %v1935_v1 = vsel %vm1931_vm10, %v4003_v40, %v2804_v50 }
 0x11d   : > { %v1951_v42 = vsel %vm1948_vm11, %v1934_v10, %v2808_v63  ;;  %v1952_v29 = vsel %vm1948_vm11, %v1935_v1, %v2809_v14  ;;  %v2824_v58 = vunpack.i.h.bf16 %v2822_v8  ;;  %v2823_v3 = vunpack.i.l.bf16 %v2822_v8 }
 0x11e   : > { %v2858_v8 = vunpack.i.l.bf16 %v2857_v7  ;;  %v2859_v14 = vunpack.i.h.bf16 %v2857_v7 }
 0x11f   : > { %v1961_v6 = vsel %vm1948_vm11, %v1944_v36, %v2823_v3  ;;  %v1962_v28 = vsel %vm1948_vm11, %v1945_v41, %v2824_v58 }
 0x120   : > { %v2872_v49 = vpop.permute.xlu2 %2871 }
 0x121   : > { %v2817_v2 = vpop.permute.xlu0 %2816 }
 0x122   : > { %v2819_v22 = vunpack.i.h.bf16 %v2817_v2  ;;  %v2818_v32 = vunpack.i.l.bf16 %v2817_v2 }
 0x124   : > { %v1968_v9 = vsel %vm1965_vm12, %v1951_v42, %v2818_v32  ;;  %v1969_v52 = vsel %vm1965_vm12, %v1952_v29, %v2819_v22  ;;  %v2837_v13 = vpop.permute.xlu1 %2836 }
 0x125   : > { %v2839_v18 = vunpack.i.h.bf16 %v2837_v13  ;;  %v2838_v16 = vunpack.i.l.bf16 %v2837_v13  ;;  %v1985_v5 = vsel %vm1982_vm13, %v1968_v9, %v2828_v59  ;;  %v1986_v40 = vsel %vm1982_vm13, %v1969_v52, %v2829_v47 }
 0x127   : > { %v2002_v62 = vsel %vm1999_vm14, %v1985_v5, %v2838_v16  ;;  %v2003_v31 = vsel %vm1999_vm14, %v1986_v40, %v2839_v18  ;;  %v2874_v40 = vunpack.i.h.bf16 %v2872_v49 }
 0x128   : > { %v2019_v43 = vsel %vm2016_vm15, %v2002_v62, 0.0  ;;  %v2020_v55 = vsel %vm2016_vm15, %v2003_v31, 0.0  ;;  %v2887_v22 = vpop.permute.xlu2 %2886 }
 0x129   : > { %v2832_v0 = vpop.permute.xlu0 %2831  ;;  %v2034_v51 = vpack.c.bf16 %v2020_v55, %v2019_v43  ;;  %v2889_v32 = vunpack.i.h.bf16 %v2887_v22  ;;  %v2888_v47 = vunpack.i.l.bf16 %v2887_v22 }
 0x12a   : > { %v2834_v44 = vunpack.i.h.bf16 %v2832_v0  ;;  %v2833_v26 = vunpack.i.l.bf16 %v2832_v0  ;;  %v2873_v0 = vunpack.i.l.bf16 %v2872_v49 }
 0x12b   : > { %2489 = vmatmul.msk.bf16.gmra.mxu0 %vm2061_vm0, %v2034_v51 }
 0x12c   : > { %v1978_v38 = vsel %vm1965_vm12, %v1961_v6, %v2833_v26  ;;  %v1979_v4 = vsel %vm1965_vm12, %v1962_v28, %v2834_v44 }
 0x12d   : > { %v1995_v45 = vsel %vm1982_vm13, %v1978_v38, %v2843_v46  ;;  %v1996_v35 = vsel %vm1982_vm13, %v1979_v4, %v2844_v24  ;;  %v2852_v34 = vpop.permute.xlu1 %2851 }
 0x12e   : > { %v2853_v50 = vunpack.i.l.bf16 %v2852_v34  ;;  %v2854_v39 = vunpack.i.h.bf16 %v2852_v34 }
 0x130   : > { %v1938_v63 = vsel %vm1931_vm10, %v3931_v61, %v2853_v50  ;;  %v1939_v1 = vsel %vm1931_vm10, %v3938_v12, %v2854_v39 }
 0x131   : > { %v2847_v17 = vpop.permute.xlu0 %2846  ;;  %v1955_v59 = vsel %vm1948_vm11, %v1938_v63, %v2858_v8  ;;  %v1956_v29 = vsel %vm1948_vm11, %v1939_v1, %v2859_v14 }
 0x132   : > { %v2849_v20 = vunpack.i.h.bf16 %v2847_v17  ;;  %v2848_v25 = vunpack.i.l.bf16 %v2847_v17 }
 0x134   : > { %v2012_v48 = vsel %vm1999_vm14, %v1995_v45, %v2848_v25  ;;  %v2013_v21 = vsel %vm1999_vm14, %v1996_v35, %v2849_v20 }
 0x135   : > { %v2029_v11 = vsel %vm2016_vm15, %v2012_v48, 0.0  ;;  %v2030_v27 = vsel %vm2016_vm15, %v2013_v21, 0.0  ;;  %v2867_v60 = vpop.permute.xlu1 %2866 }
 0x136   : > { %v2039_v56 = vpack.c.bf16 %v2030_v27, %v2029_v11  ;;  %v2869_v2 = vunpack.i.h.bf16 %v2867_v60  ;;  %v2868_v37 = vunpack.i.l.bf16 %v2867_v60 }
 0x138   : > { %2494 = vmatmul.msk.bf16.vlgmr.msra.gmra.mxu3 %vm2061_vm0, %v2039_v56  ;;  %v1972_v18 = vsel %vm1965_vm12, %v1955_v59, %v2868_v37  ;;  %v1973_v61 = vsel %vm1965_vm12, %v1956_v29, %v2869_v2 }
 0x13d   : > { %v2882_v10 = vpop.permute.xlu1 %2881 }
 0x13e   : > { %v2862_v19 = vpop.permute.xlu0 %2861  ;;  %v2884_v51 = vunpack.i.h.bf16 %v2882_v10  ;;  %v2883_v58 = vunpack.i.l.bf16 %v2882_v10 }
 0x13f   : > { %v2863_v9 = vunpack.i.l.bf16 %v2862_v19  ;;  %v2864_v16 = vunpack.i.h.bf16 %v2862_v19 }
 0x141   : > { %v1942_v43 = vsel %vm1931_vm10, %v3967_v53, %v2863_v9  ;;  %v1943_v23 = vsel %vm1931_vm10, %v3961_v54, %v2864_v16  ;;  %v2902_v54 = vpop.permute.xlu2 %2901 }
 0x142   : > { %v1959_v41 = vsel %vm1948_vm11, %v1942_v43, %v2873_v0  ;;  %v1960_v53 = vsel %vm1948_vm11, %v1943_v23, %v2874_v40  ;;  %v2904_v48 = vunpack.i.h.bf16 %v2902_v54  ;;  %v2903_v21 = vunpack.i.l.bf16 %v2902_v54 }
 0x143   : > { %v1976_v6 = vsel %vm1965_vm12, %v1959_v41, %v2883_v58  ;;  %v1977_v28 = vsel %vm1965_vm12, %v1960_v53, %v2884_v51 }
 0x144   : > { %v1946_v7 = vsel %vm1931_vm10, %v4007_v30, %v2903_v21  ;;  %v1947_v60 = vsel %vm1931_vm10, %v4015_v33, %v2904_v48 }
 0x14a   : > { %v2877_v42 = vpop.permute.xlu0 %2876 }
 0x14b   : > { %v2879_v52 = vunpack.i.h.bf16 %v2877_v42  ;;  %v2878_v13 = vunpack.i.l.bf16 %v2877_v42 }
 0x14c   : > { %v2897_v44 = vpop.permute.xlu1 %2896 }
 0x14d   : > { %v1990_v12 = vsel %vm1982_vm13, %v1973_v61, %v2879_v52  ;;  %v1989_v5 = vsel %vm1982_vm13, %v1972_v18, %v2878_v13  ;;  %v2899_v57 = vunpack.i.h.bf16 %v2897_v44  ;;  %v2898_v36 = vunpack.i.l.bf16 %v2897_v44 }
 0x14e   : > { %v2006_v62 = vsel %vm1999_vm14, %v1989_v5, %v2888_v47  ;;  %v2007_v31 = vsel %vm1999_vm14, %v1990_v12, %v2889_v32 }
 0x14f   : > { %v2023_v55 = vsel %vm2016_vm15, %v2006_v62, 0.0  ;;  %v2024_v15 = vsel %vm2016_vm15, %v2007_v31, 0.0 }
 0x150   : > { %v2036_v3 = vpack.c.bf16 %v2024_v15, %v2023_v55 }
 0x152   : > { %v2892_v26 = vpop.permute.xlu0 %2891  ;;  %2491 = vmatmul.msk.bf16.gmra.mxu1 %vm2061_vm0, %v2036_v3 }
 0x153   : > { %v2894_v24 = vunpack.i.h.bf16 %v2892_v26  ;;  %v2893_v46 = vunpack.i.l.bf16 %v2892_v26 }
 0x154   : > { %v2912_v11 = vpop.permute.xlu1 %2911  ;;  %v2917_v50 = vpop.permute.xlu2 %2916 }
 0x155   : > { %v1993_v38 = vsel %vm1982_vm13, %v1976_v6, %v2893_v46  ;;  %v1994_v4 = vsel %vm1982_vm13, %v1977_v28, %v2894_v24  ;;  %v2914_v49 = vunpack.i.h.bf16 %v2912_v11  ;;  %v2913_v19 = vunpack.i.l.bf16 %v2912_v11 }
 0x156   : > { %v2010_v17 = vsel %vm1999_vm14, %v1993_v38, %v2898_v36  ;;  %v2011_v20 = vsel %vm1999_vm14, %v1994_v4, %v2899_v57  ;;  %v2919_v14 = vunpack.i.h.bf16 %v2917_v50  ;;  %v2918_v63 = vunpack.i.l.bf16 %v2917_v50 }
 0x157   : > { %v2027_v25 = vsel %vm2016_vm15, %v2010_v17, 0.0  ;;  %v2028_v45 = vsel %vm2016_vm15, %v2011_v20, 0.0 }
 0x158   : > { %v2038_v35 = vpack.c.bf16 %v2028_v45, %v2027_v25 }
 0x15a   : > { %v2907_v34 = vpop.permute.xlu0 %2906  ;;  %2493 = vmatmul.msk.bf16.gmra.mxu2 %vm2061_vm0, %v2038_v35 }
 0x15b   : > { %v2909_v27 = vunpack.i.h.bf16 %v2907_v34  ;;  %v2908_v56 = vunpack.i.l.bf16 %v2907_v34 }
 0x15d   : > { %v1963_v39 = vsel %vm1948_vm11, %v1946_v7, %v2908_v56  ;;  %v1964_v8 = vsel %vm1948_vm11, %v1947_v60, %v2909_v27 }
 0x15e   : > { %v1980_v10 = vsel %vm1965_vm12, %v1963_v39, %v2913_v19  ;;  %v1981_v1 = vsel %vm1965_vm12, %v1964_v8, %v2914_v49 }
 0x15f   : > { %v1997_v22 = vsel %vm1982_vm13, %v1980_v10, %v2918_v63  ;;  %v1998_v33 = vsel %vm1982_vm13, %v1981_v1, %v2919_v14 }
 0x162   : > { %v2922_v2 = vpop.permute.xlu0 %2921 }
 0x163   : > { %v2924_v37 = vunpack.i.h.bf16 %v2922_v2  ;;  %v2923_v30 = vunpack.i.l.bf16 %v2922_v2 }
 0x165   : > { %v2014_v32 = vsel %vm1999_vm14, %v1997_v22, %v2923_v30  ;;  %v2015_v47 = vsel %vm1999_vm14, %v1998_v33, %v2924_v37 }
 0x166   : > { %v2031_v59 = vsel %vm2016_vm15, %v2014_v32, 0.0  ;;  %v2032_v42 = vsel %vm2016_vm15, %v2015_v47, 0.0 }
 0x167   : > { %v2040_v29 = vpack.c.bf16 %v2032_v42, %v2031_v59 }
 0x169   : > { %2495 = vmatmul.msk.bf16.gmra.mxu3 %vm2061_vm0, %v2040_v29 }
 0x17e   : > { %v2099_v9 = vpop.f32.mrf.mxu0 }
 0x17f   : > { %2139 = vst [vmem:[%s4156_s24] sm:$0xff] %v2099_v9  ;;  %v2176_v13 = vmul.f32 %v2099_v9, %v2099_v9 }
 0x186   : > { %v2101_v52 = vpop.f32.mrf.mxu0 }
 0x187   : > { %2140 = vst [vmem:[%s4156_s24 + $0x8] sm:$0xff] %v2101_v52  ;;  %v2155_v18 = vadd.f32 %v2101_v52, %v2099_v9  ;;  %v2177_v61 = vmul.f32 %v2101_v52, %v2101_v52 }
 0x189   : > { %v2192_v16 = vadd.f32 %v2177_v61, %v2176_v13 }
 0x195   : > { %v2109_v12 = vpop.f32.mrf.mxu1 }
 0x196   : > { %2143 = vst [vmem:[%s4156_s24 + $0x20] sm:$0xff] %v2109_v12  ;;  %v2180_v58 = vmul.f32 %v2109_v12, %v2109_v12 }
 0x197   : > { %v2119_v5 = vpop.f32.mrf.mxu2 }
 0x198   : > { %2147 = vst [vmem:[%s4156_s24 + $0x40] sm:$0xff] %v2119_v5  ;;  %v2184_v20 = vmul.f32 %v2119_v5, %v2119_v5 }
 0x19d   : > { %v2111_v40 = vpop.f32.mrf.mxu1 }
 0x19e   : > { %2144 = vst [vmem:[%s4156_s24 + $0x28] sm:$0xff] %v2111_v40  ;;  %v2181_v26 = vmul.f32 %v2111_v40, %v2111_v40 }
 0x19f   : > { %v2121_v62 = vpop.f32.mrf.mxu2 }
 0x1a0   : > { %2148 = vst [vmem:[%s4156_s24 + $0x48] sm:$0xff] %v2121_v62  ;;  %v2185_v35 = vmul.f32 %v2121_v62, %v2121_v62 }
 0x1a8   : > { %v2104_v31 = vpop.f32.mrf.mxu0 }
 0x1a9   : > { %2141 = vst [vmem:[%s4156_s24 + $0x10] sm:$0xff] %v2104_v31  ;;  %v2178_v0 = vmul.f32 %v2104_v31, %v2104_v31  ;;  %v2156_v43 = vadd.f32 %v2155_v18, %v2104_v31 }
 0x1ab   : > { %v2193_v15 = vadd.f32 %v2192_v16, %v2178_v0 }
 0x1b0   : > { %v2106_v55 = vpop.f32.mrf.mxu0 }
 0x1b1   : > { %2142 = vst [vmem:[%s4156_s24 + $0x18] sm:$0xff] %v2106_v55  ;;  %v2157_v23 = vadd.f32 %v2156_v43, %v2106_v55  ;;  %v2179_v51 = vmul.f32 %v2106_v55, %v2106_v55 }
 0x1b3   : > { %v2158_v3 = vadd.f32 %v2157_v23, %v2109_v12  ;;  %v2194_v44 = vadd.f32 %v2193_v15, %v2179_v51 }
 0x1b5   : > { %v2195_v57 = vadd.f32 %v2194_v44, %v2180_v58  ;;  %v2159_v36 = vadd.f32 %v2158_v3, %v2111_v40 }
 0x1b7   : > { %v2196_v41 = vadd.f32 %v2195_v57, %v2181_v26 }
 0x1bb   : > { %v2129_v53 = vpop.f32.mrf.mxu3 }
 0x1bc   : > { %2151 = vst [vmem:[%s4156_s24 + $0x60] sm:$0xff] %v2129_v53  ;;  %v2188_v39 = vmul.f32 %v2129_v53, %v2129_v53 }
 0x1c3   : > { %v2131_v24 = vpop.f32.mrf.mxu3 }
 0x1c4   : > { %2152 = vst [vmem:[%s4156_s24 + $0x68] sm:$0xff] %v2131_v24  ;;  %v2189_v10 = vmul.f32 %v2131_v24, %v2131_v24 }
 0x1cf   : > { %v2114_v46 = vpop.f32.mrf.mxu1 }
 0x1d0   : > { %2145 = vst [vmem:[%s4156_s24 + $0x30] sm:$0xff] %v2114_v46  ;;  %v2182_v6 = vmul.f32 %v2114_v46, %v2114_v46  ;;  %v2160_v28 = vadd.f32 %v2159_v36, %v2114_v46 }
 0x1d2   : > { %v2197_v38 = vadd.f32 %v2196_v41, %v2182_v6 }
 0x1d7   : > { %v2116_v54 = vpop.f32.mrf.mxu1 }
 0x1d8   : > { %2146 = vst [vmem:[%s4156_s24 + $0x38] sm:$0xff] %v2116_v54  ;;  %v2161_v4 = vadd.f32 %v2160_v28, %v2116_v54  ;;  %v2183_v17 = vmul.f32 %v2116_v54, %v2116_v54 }
 0x1da   : > { %v2162_v25 = vadd.f32 %v2161_v4, %v2119_v5  ;;  %v2198_v45 = vadd.f32 %v2197_v38, %v2183_v17 }
 0x1dc   : > { %v2199_v48 = vadd.f32 %v2198_v45, %v2184_v20  ;;  %v2163_v21 = vadd.f32 %v2162_v25, %v2121_v62 }
 0x1dd   : > { %v2124_v34 = vpop.f32.mrf.mxu2 }
 0x1de   : > { %2149 = vst [vmem:[%s4156_s24 + $0x50] sm:$0xff] %v2124_v34  ;;  %v2200_v11 = vadd.f32 %v2199_v48, %v2185_v35  ;;  %v2186_v27 = vmul.f32 %v2124_v34, %v2124_v34  ;;  %v2164_v56 = vadd.f32 %v2163_v21, %v2124_v34 }
 0x1e0   : > { %v2201_v49 = vadd.f32 %v2200_v11, %v2186_v27 }
 0x1e5   : > { %v2126_v7 = vpop.f32.mrf.mxu2 }
 0x1e6   : > { %2150 = vst [vmem:[%s4156_s24 + $0x58] sm:$0xff] %v2126_v7  ;;  %v2187_v60 = vmul.f32 %v2126_v7, %v2126_v7  ;;  %v2165_v19 = vadd.f32 %v2164_v56, %v2126_v7 }
 0x1e8   : > { %v2202_v50 = vadd.f32 %v2201_v49, %v2187_v60  ;;  %v2166_v8 = vadd.f32 %v2165_v19, %v2129_v53 }
 0x1ea   : > { %v2203_v63 = vadd.f32 %v2202_v50, %v2188_v39  ;;  %v2167_v1 = vadd.f32 %v2166_v8, %v2131_v24 }
 0x1ec   : > { %v2134_v14 = vpop.f32.mrf.mxu3  ;;  %v2204_v37 = vadd.f32 %v2203_v63, %v2189_v10 }
 0x1ed   : > { %2153 = vst [vmem:[%s4156_s24 + $0x70] sm:$0xff] %v2134_v14  ;;  %v2190_v2 = vmul.f32 %v2134_v14, %v2134_v14  ;;  %v2168_v30 = vadd.f32 %v2167_v1, %v2134_v14 }
 0x1ef   : > { %v2205_v33 = vadd.f32 %v2204_v37, %v2190_v2 }
 0x1f4   : > { %v2136_v22 = vpop.f32.mrf.mxu3 }
 0x1f5   : > { %2154 = vst [vmem:[%s4156_s24 + $0x78] sm:$0xff] %v2136_v22  ;;  %v2169_v32 = vadd.f32 %v2168_v30, %v2136_v22  ;;  %v2191_v47 = vmul.f32 %v2136_v22, %v2136_v22 }
 0x1f6   : > { %2967 = shalt.err (!%p2964_p6)
}
 0x1f7   : > { %s3076_s16 = smov 128   ;;  %v2170_v59 = vrot.slane %v2169_v32, 4  ;;  %v2206_v42 = vadd.f32 %v2205_v33, %v2191_v47  ;;  %s2252_s24 = sadd.s32 %s3050_s15, %s2502_s20  ;;  %vm2213_vm1 = vcmask 1040384  }
 0x1f8   : > { %2520 = dma.vmem_to_hbm [thread:$0]  (%p3148_p3), %s2238_s8, 2048, %s2240_s9, %s2217_s21, %s3076_s16, %s3076_s16, %s3068_s11  }
 0x1f9   : > { %v2171_v29 = vadd.f32 %v2170_v59, %v2169_v32  ;;  %v2207_v9 = vrot.slane %v2206_v42, 4  ;;  %s2383_s29 = sshll.u32 %s4153_s10, 1  ;;  %s2503_s27 = sshll.u32 %s2252_s24, 1 }
 0x1fa   : > { %s2254_s5 = scalar_lea.hbm %s4240_s3, %s2503_s27  ;;  %s190_s11 = scalar_lea.vmem [#allocation4], %s2383_s29 }
 0x1fb   : > { %v2172_v52 = vrot.slane %v2171_v29, 2  ;;  %v2208_v13 = vadd.f32 %v2207_v9, %v2206_v42  ;;  %s2256_s8 = sshll.u32 %s190_s11, 4  ;;  %s2258_s15 = sshll.u32 %s2254_s5, 4  ;;  %s2257_s8 = int_to_ptr.vmem [resolvable:$true] %s2256_s8  ;;  %s2259_s15 = int_to_ptr.hbm [resolvable:$true] %s2258_s15 }
 0x1fc   : > { %s2222_s9 = scalar_lea.sflag [#allocation5], %s4153_s10  ;;  %s2982_s20 = sshra.s32 %s2259_s15, 4  ;;  %s2983_s20 = int_to_ptr.hbm [resolvable:$true] %s2982_s20 }
 0x1fd   : > { %v2173_v18 = vadd.f32 %v2172_v52, %v2171_v29  ;;  %v2209_v61 = vrot.slane %v2208_v13, 2  ;;  %s2984_s21 = scalar_lea.hbm %s2983_s20, 2  ;;  %s2988_s16 = scalar_lea.hbm %s4240_s3, 8 }
 0x1fe   : > { %p2985_p7 = scmp.ne.s32.totalorder %s2983_s20, %s2984_s21  ;;  %p2989_p11 = scmp.lt.s32.totalorder %s2983_s20, %s4240_s3 }
 0x1ff   : > { %v2174_v16 = vrot.slane %v2173_v18, 1  ;;  %v2210_v12 = vadd.f32 %v2209_v61, %v2208_v13  ;;  %p2990_p12 = scmp.lt.s32.totalorder %s2988_s16, %s2984_s21 }
 0x200   : > { %p2986_p9 = pnand %p2985_p7, %p3148_p3 }
 0x201   : > { %v2211_v5 = vrot.slane %v2210_v12, 1  ;;  %v2175_v40 = vadd.f32 %v2174_v16, %v2173_v18  ;;  %p2991_p13 = por %p2990_p12, %p2989_p11 }
 0x202   : > { %p2987_p10 = pneg %p2986_p9 }
 0x203   : > { %v2212_v62 = vadd.f32 %v2211_v5, %v2210_v12 }
 0x204   : > { %p2992_p0 = pnand %p2991_p13, %p2987_p10 }
 0x205   : > { %v2214_v31 = vsel %vm2213_vm1, %v2175_v40, %v2212_v62 }
 0x206   : > { %2215 = vst [vmem:[%s190_s11] sm:$0x3] %v2214_v31 }
 0x207   : > { %2995 = shalt.err (!%p2992_p0)
}
 0x208   : > { %2521 = dma.vmem_to_hbm [thread:$0]  (%p3148_p3), %s2257_s8, 32, %s2259_s15, %s2222_s9  }
 0x209 PF: > { %p2531_p1 = scmp.ge.s32.totalorder %s3066_s19, 2  ;;  %s2270_s10 = sand.u32 1, %s3038_s12  }
 0x20a   : > { %s2271_s27 = scalar_lea.sflag [#allocation3], %s2270_s10 }
 0x20b   : > { %p2525_p2 = pnand %p2531_p1, %p3157_p8 }
 0x20d   : > { %p2526_p4 = pneg %p2525_p2 }
 0x20f   : > { %3029 = dma.done.wait (%p2526_p4), %s2271_s27, 2048  }
 0x210   : > { %3031 = vsyncadd (%p2526_p4), %s2271_s27, 4294965248  ;;  %s2281_s28 = scalar_lea.sflag [#allocation5], %s2270_s10 }
 0x211   : > { %3033 = dma.done.wait (%p2526_p4), %s2281_s28, 32  }
 0x212   : > { %3035 = vsyncadd (%p2526_p4), %s2281_s28, 4294967264  ;;  %s20_s19 = sadd.s32 1, %s3066_s19   ;;  %s4247_s12 = smov %s3042_s13 }
 0x213   : > { %p17_p5 = scmp.ge.s32.totalorder %s20_s19, 6   ;;  %s4248_s13 = smov %s3046_s14 }
 0x214   : > { %s4249_s14 = smov %s3166_s30  ;;  %s4250_s15 = smov %s3058_s17 }
 0x215   : > { %s4251_s16 = smov %s3062_s18  ;;  %s4252_s17 = smov %s4255_s22 }
 0x216   : > { %s4253_s18 = smov %s4259_s23  ;;  %19 = sbr.rel (!%p17_p5) target bundleno = 7 (0x7), region = 83 }
 0x21b   :  { %2287 = vsyncpa [#allocation3], 1 }
 0x21c   :  { %2289 = vsyncpa [#allocation3 + $0x1], 1 }
 0x21d   :  { %2290 = vsyncpa [#allocation5], 1 }
 0x21e   :  { %2292 = vsyncpa [#allocation5 + $0x1], 1 }

</bundles_post_ra>
